<compile_context>
chip_gen: v6e
topology: v6e:2x2x1
jax: 0.10.0
libtpu: 0.0.40
codegen_flags: <defaults>
</compile_context>

<pallas_src>
import numpy as np

import jax
import jax.numpy as jnp
from jax.experimental import pallas as pl
from jax.experimental.pallas import tpu as pltpu

VMEM = pl.BlockSpec(memory_space=pltpu.MemorySpace.VMEM)
SMEM = pl.BlockSpec(memory_space=pltpu.MemorySpace.SMEM)

LANE = 128  # lane-tile width; packed weight column blocks are padded to this


def _softplus(x):
    return jnp.maximum(x, 0.0) + jnp.log1p(jnp.exp(-jnp.abs(x)))


def _lane_block(d):
    return ((d + LANE - 1) // LANE) * LANE


# --------------------------- fused forward kernel ---------------------------
def make_fused_kernel(dim_x, feat_dims, decoder_free):
    """Build the fused MNVAECell forward kernel for static dims/flags."""
    D = dim_x
    LB = _lane_block(D)          # 128-lane-aligned column block
    n_img = len(feat_dims)

    def kernel(*refs):
        it = iter(refs)
        # ---- inputs ----
        sc_ref = next(it)                                   # SMEM [1,2]: dt, 1/dt
        x1_ref = next(it); x2_ref = next(it); u_ref = next(it)   # [B,D]
        eps_p_ref = next(it); eps_q_ref = next(it)               # [B,D]
        log_sig_p_ref = next(it); sig_p_ref = next(it); inv2sp2_ref = next(it)  # [1,D]
        wx_ref = next(it); wv_ref = next(it); wu_ref = next(it); babc_ref = next(it)
        wh_ref = next(it); bh_ref = next(it); bf_ref = next(it)
        flat16 = [next(it) for _ in range(n_img)]           # [B,F_i] bf16 (encoder)
        wf = [next(it) for _ in range(n_img)]               # [F_i,H]  bf16
        if not decoder_free:
            flat32 = [next(it) for _ in range(n_img)]       # [B,F_i] f32 (MSE target)
            wd = [next(it) for _ in range(n_img)]           # [D,F_i] bf16
            bd = [next(it) for _ in range(n_img)]           # [1,F_i] f32
        # ---- outputs ----
        v_ref = next(it); xq_ref = next(it)                 # [B,D] f32
        if not decoder_free:
            rec_out = [next(it) for _ in range(n_img)]      # [B,F_i] bf16
        scal_ref = next(it)                                 # SMEM [1, n_scal]

        dt = sc_ref[0, 0]
        inv_dt = sc_ref[0, 1]
        batch = x1_ref.shape[0]
        inv_b = 1.0 / batch                                 # static -> constant multiply

        x1 = x1_ref[...]
        u = u_ref[...]
        v_tn1 = (x1 - x2_ref[...]) * inv_dt

        # ---- velocity + transition (f32, tiny matmuls) ----
        # A|B|C column blocks are padded to 128 lanes -> all slices tile-aligned.
        abc = (jnp.dot(x1, wx_ref[...], preferred_element_type=jnp.float32)
               + jnp.dot(v_tn1, wv_ref[...], preferred_element_type=jnp.float32)
               + jnp.dot(u, wu_ref[...], preferred_element_type=jnp.float32)
               + babc_ref[...])                              # [B, 3*LB]
        A = abc[:, 0:D]
        Bm = -_softplus(abc[:, LB:LB + D])
        Cm = _softplus(abc[:, 2 * LB:2 * LB + D])
        v_t = v_tn1 + dt * (A * x1 + Bm * v_tn1 + Cm * u)
        v_ref[...] = v_t

        mu_p = x1 + v_t * dt
        x_p_t = mu_p + sig_p_ref[...] * eps_p_ref[...]       # rsample from p

        # ---- multi-image encoder: per-image K-split matmuls, f32 accumulation ----
        feat = jnp.dot(flat16[0][...], wf[0][...], preferred_element_type=jnp.float32)
        for i in range(1, n_img):
            feat = feat + jnp.dot(flat16[i][...], wf[i][...],
                                  preferred_element_type=jnp.float32)
        feat = jnp.maximum(feat + bf_ref[...], 0.0)          # [B, H]
        head = (jnp.dot(feat, wh_ref[...], preferred_element_type=jnp.float32)
                + bh_ref[...])                               # [B, 2*LB]
        mu_q = head[:, 0:D]
        sig_q = _softplus(head[:, LB:LB + D])
        xq_ref[...] = mu_q + sig_q * eps_q_ref[...]          # rsample from q

        # ---- decoder + per-image MSE (statically skipped in decoder_free mode) ----
        if not decoder_free:
            xp16 = x_p_t.astype(jnp.bfloat16)                # tiny [B,D] cast
            for i in range(n_img):
                rec = (jnp.dot(xp16, wd[i][...], preferred_element_type=jnp.float32)
                       + bd[i][...])                         # [B,F_i] f32 accumulator
                diff = rec - flat32[i][...]
                # img_reduction: sum over (C,H,W), mean over batch
                scal_ref[0, i] = jnp.sum(diff * diff) * inv_b
                rec_out[i][...] = rec.astype(jnp.bfloat16)   # bf16 writeback

        # ---- KL(q || p) and KL(q || N(0,1)), vec_reduction ----
        log_sig_q = jnp.log(sig_q)
        var_q = sig_q * sig_q
        dmu = mu_q - mu_p
        kl = (log_sig_p_ref[...] - log_sig_q
              + (var_q + dmu * dmu) * inv2sp2_ref[...] - 0.5)
        base = 0 if decoder_free else n_img
        scal_ref[0, base] = jnp.sum(kl) * inv_b
        reg = -log_sig_q + 0.5 * (var_q + mu_q * mu_q) - 0.5
        scal_ref[0, base + 1] = jnp.sum(reg) * inv_b

    return kernel


# --------------------------- parameter packing ---------------------------
def pack_params(params, dim_x):
    """Stack per-component weights into kernel-ready, lane-aligned layouts (once)."""
    D = dim_x
    LB = _lane_block(D)

    def pad_cols(w):
        return jnp.pad(w, ((0, 0), (0, LB - w.shape[1])))

    def stack_blocks(lo, hi):
        # column-stack A|B|C blocks, each zero-padded to a 128-lane boundary
        return jnp.concatenate(
            [pad_cols(params[k][lo:hi]) for k in ("W_a", "W_b", "W_c")], axis=1)

    p = {}
    # Velocity: rows of W_a/W_b/W_c correspond to [x | v | u].
    p["W_x"] = stack_blocks(0, D)                    # [D, 3*LB]
    p["W_v"] = stack_blocks(D, 2 * D)
    p["W_u"] = stack_blocks(2 * D, 3 * D)
    p["b_abc"] = jnp.concatenate(
        [pad_cols(params[k]) for k in ("b_a", "b_b", "b_c")], axis=1)   # [1, 3*LB]
    # Transition noise: parameter-only precomputes (no in-kernel log/div on sig_p).
    sig_p = _softplus(params["raw_sig_p"])           # [1, D]
    p["sig_p"] = sig_p
    p["log_sig_p"] = jnp.log(sig_p)
    p["inv_2sig_p2"] = 1.0 / (2.0 * sig_p * sig_p)
    # Encoder: per-image bf16 feature weights (K-split in kernel), summed biases,
    # 128-lane-padded column-stacked mu|sigma head.
    p["W_f"] = [w.astype(jnp.bfloat16) for w in params["W_f"]]
    p["b_f"] = jnp.sum(jnp.stack(params["b_f"], axis=0), axis=0)        # [1, H]
    p["W_head"] = jnp.concatenate(
        [pad_cols(params["W_mu"]), pad_cols(params["W_sig"])], axis=1)  # [H, 2*LB]
    p["b_head"] = jnp.concatenate(
        [pad_cols(params["b_mu"]), pad_cols(params["b_sig"])], axis=1)  # [1, 2*LB]
    # Decoder: per-image bf16 weights + f32 biases.
    p["W_dec"] = [w.astype(jnp.bfloat16) for w in params["W_dec"]]
    p["b_dec"] = list(params["b_dec"])
    return p


# --------------------------- wrapper ---------------------------
def mnvae_cell_forward(packed, I_t, x_q_tn1, x_q_tn2, u_tn1, dt, eps_p, eps_q,
                       *, alpha=1.0, kl_beta=1.0, regularization=False,
                       decoder_free=False):
    if alpha == 0:
        decoder_free = True
    B, D = x_q_tn1.shape
    n_img = len(I_t)
    feat_dims = [int(np.prod(im.shape[1:])) for im in I_t]
    flats32 = [im.reshape(B, -1).astype(jnp.float32) for im in I_t]
    flats16 = [f.astype(jnp.bfloat16) for f in flats32]   # cast in wrapper, not in-kernel
    sc = jnp.array([[dt, 1.0 / dt]], dtype=jnp.float32)

    kernel = make_fused_kernel(D, feat_dims, decoder_free)

    inputs = [sc, x_q_tn1, x_q_tn2, u_tn1, eps_p, eps_q,
              packed["log_sig_p"], packed["sig_p"], packed["inv_2sig_p2"],
              packed["W_x"], packed["W_v"], packed["W_u"], packed["b_abc"],
              packed["W_head"], packed["b_head"], packed["b_f"]]
    inputs += flats16 + list(packed["W_f"])
    if not decoder_free:
        # f32 flats are only needed as MSE targets
        inputs += flats32 + list(packed["W_dec"]) + list(packed["b_dec"])

    n_scal = 2 if decoder_free else n_img + 2
    out_shape = [jax.ShapeDtypeStruct((B, D), jnp.float32),     # v_t
                 jax.ShapeDtypeStruct((B, D), jnp.float32)]     # x_q_t
    out_specs = [VMEM, VMEM]
    if not decoder_free:
        out_shape += [jax.ShapeDtypeStruct((B, fd), jnp.bfloat16) for fd in feat_dims]
        out_specs += [VMEM] * n_img
    out_shape.append(jax.ShapeDtypeStruct((1, n_scal), jnp.float32))
    out_specs.append(SMEM)

    # TODO(synk): for sequence training, lift this to a grid=(T,) pallas_call with
    # constant-block weight index_maps (or batch encoder/decoder over B*T rows); the
    # cell API in the spec is single-step, so a grid-less call is emitted here.
    outs = pl.pallas_call(
        kernel,
        out_shape=tuple(out_shape),
        in_specs=[SMEM] + [VMEM] * (len(inputs) - 1),
        out_specs=tuple(out_specs),
        compiler_params=pltpu.CompilerParams(vmem_limit_bytes=32 * 1024 * 1024),
    )(*inputs)

    v_t, x_q_t = outs[0], outs[1]
    scal = outs[-1]
    base = 0 if decoder_free else n_img
    E_kl = scal[0, base]
    reg_kl = scal[0, base + 1]

    recs = jnp.float32(0.0)
    image_losses = []
    if not decoder_free:
        for i in range(n_img):
            image_losses.append(scal[0, i])
            recs = recs - scal[0, i]

    beta_kl = kl_beta * E_kl
    E = alpha * recs - beta_kl
    if regularization:
        E = E - reg_kl

    # TODO(synk): .item()/.detach()/requires_grad_ are host-side / autograd-mode ops
    # with no Pallas equivalent; values are returned as JAX scalars instead.
    out = {"E": E, "x_q_t": x_q_t, "v_t": v_t, "KL_loss": E_kl, "beta_kl": beta_kl}
    if not decoder_free:
        out["image_losses"] = image_losses
        # reconstructions returned in bf16 (logging/visualization precision)
        out["I_t_recs"] = [outs[2 + i].reshape(I_t[i].shape) for i in range(n_img)]
    return out


# ------------------ pure-JAX reference (original per-component math) ------------------
def mnvae_cell_forward_ref(params, I_t, x_q_tn1, x_q_tn2, u_tn1, dt, eps_p, eps_q,
                           *, alpha=1.0, kl_beta=1.0):
    v_tn1 = (x_q_tn1 - x_q_tn2) / dt
    inp = jnp.concatenate([x_q_tn1, v_tn1, u_tn1], axis=-1)
    A = inp @ params["W_a"] + params["b_a"]
    Bm = -_softplus(inp @ params["W_b"] + params["b_b"])
    Cm = _softplus(inp @ params["W_c"] + params["b_c"])
    v_t = v_tn1 + dt * (A * x_q_tn1 + Bm * v_tn1 + Cm * u_tn1)
    mu_p = x_q_tn1 + v_t * dt
    sig_p = _softplus(params["raw_sig_p"])
    x_p_t = mu_p + sig_p * eps_p

    flats = [im.reshape(im.shape[0], -1) for im in I_t]
    f = 0.0
    for i in range(len(I_t)):
        # same bf16-matmul / f32-accumulation precision as the kernel
        f = f + jnp.dot(flats[i].astype(jnp.bfloat16),
                        params["W_f"][i].astype(jnp.bfloat16),
                        preferred_element_type=jnp.float32) + params["b_f"][i]
    f = jnp.maximum(f, 0.0)
    mu_q = f @ params["W_mu"] + params["b_mu"]
    sig_q = _softplus(f @ params["W_sig"] + params["b_sig"])
    x_q_t = mu_q + sig_q * eps_q

    recs = 0.0
    for i in range(len(I_t)):
        rec = jnp.dot(x_p_t.astype(jnp.bfloat16),
                      params["W_dec"][i].astype(jnp.bfloat16),
                      preferred_element_type=jnp.float32) + params["b_dec"][i]
        recs = recs - jnp.sum((rec - flats[i]) ** 2) / flats[i].shape[0]

    kl = (jnp.log(sig_p) - jnp.log(sig_q)
          + (sig_q ** 2 + (mu_q - mu_p) ** 2) / (2.0 * sig_p ** 2) - 0.5)
    E_kl = jnp.mean(jnp.sum(kl, axis=-1))
    E = alpha * recs - kl_beta * E_kl
    return E, x_q_t, v_t, E_kl


def init_params(key, dim_x, feat_dims, hidden):
    ks = iter(jax.random.split(key, 32))
    s = 0.05
    p = {}
    p["W_a"] = jax.random.normal(next(ks), (3 * dim_x, dim_x), jnp.float32) * s
    p["b_a"] = jnp.zeros((1, dim_x), jnp.float32)
    p["W_b"] = jax.random.normal(next(ks), (3 * dim_x, dim_x), jnp.float32) * s
    p["b_b"] = jnp.zeros((1, dim_x), jnp.float32)
    p["W_c"] = jax.random.normal(next(ks), (3 * dim_x, dim_x), jnp.float32) * s
    p["b_c"] = jnp.zeros((1, dim_x), jnp.float32)
    p["raw_sig_p"] = jnp.full((1, dim_x), 0.1, jnp.float32)
    p["W_f"] = [jax.random.normal(next(ks), (fd, hidden), jnp.float32) * s for fd in feat_dims]
    p["b_f"] = [jnp.zeros((1, hidden), jnp.float32) for _ in feat_dims]
    p["W_mu"] = jax.random.normal(next(ks), (hidden, dim_x), jnp.float32) * s
    p["b_mu"] = jnp.zeros((1, dim_x), jnp.float32)
    p["W_sig"] = jax.random.normal(next(ks), (hidden, dim_x), jnp.float32) * s
    p["b_sig"] = jnp.zeros((1, dim_x), jnp.float32)
    p["W_dec"] = [jax.random.normal(next(ks), (dim_x, fd), jnp.float32) * s for fd in feat_dims]
    p["b_dec"] = [jnp.zeros((1, fd), jnp.float32) for fd in feat_dims]
    return p


if __name__ == "__main__":
    B, D, C, H, W = 8, 8, 3, 16, 16
    hidden = 128
    feat_dims = [C * H * W, C * H * W]

    key = jax.random.PRNGKey(0)
    k_img1, k_img2, k_x1, k_x2, k_u, k_ep, k_eq = jax.random.split(key, 7)
    I_t = [jax.random.uniform(k_img1, (B, C, H, W), jnp.float32),
           jax.random.uniform(k_img2, (B, C, H, W), jnp.float32)]
    x_q_tn1 = jax.random.normal(k_x1, (B, D), jnp.float32)
    x_q_tn2 = jax.random.normal(k_x2, (B, D), jnp.float32)
    u_tn1 = jax.random.normal(k_u, (B, D), jnp.float32)
    eps_p = jax.random.normal(k_ep, (B, D), jnp.float32)
    eps_q = jax.random.normal(k_eq, (B, D), jnp.float32)
    dt = 0.1

    params = init_params(jax.random.PRNGKey(1), D, feat_dims, hidden)
    packed = pack_params(params, D)

    out = mnvae_cell_forward(packed, I_t, x_q_tn1, x_q_tn2, u_tn1, dt, eps_p, eps_q)
    jax.block_until_ready(out["E"])

    E_ref, x_q_t_ref, v_t_ref, kl_ref_val = mnvae_cell_forward_ref(
        params, I_t, x_q_tn1, x_q_tn2, u_tn1, dt, eps_p, eps_q)

    np.testing.assert_allclose(np.asarray(out["E"]), np.asarray(E_ref), rtol=1e-2, atol=1e-2)
    np.testing.assert_allclose(np.asarray(out["x_q_t"]), np.asarray(x_q_t_ref), rtol=1e-3, atol=1e-3)
    np.testing.assert_allclose(np.asarray(out["v_t"]), np.asarray(v_t_ref), rtol=1e-3, atol=1e-3)
    np.testing.assert_allclose(np.asarray(out["KL_loss"]), np.asarray(kl_ref_val), rtol=1e-3, atol=1e-3)

    # decoder_free specialization: decoder / rec / MSE statically removed
    out_df = mnvae_cell_forward(packed, I_t, x_q_tn1, x_q_tn2, u_tn1, dt, eps_p, eps_q,
                                decoder_free=True)
    jax.block_until_ready(out_df["E"])
    np.testing.assert_allclose(np.asarray(out_df["KL_loss"]), np.asarray(kl_ref_val),
                               rtol=1e-3, atol=1e-3)
    assert "I_t_recs" not in out_df

    print("KERNEL_OK")
</pallas_src>

<mosaic_0001>
module attributes {stable_mosaic.version = 11 : i64} {
  func.func @kernel(%arg0: memref<1x2xf32, #tpu.memory_space<smem>>, %arg1: memref<8x8xf32, #tpu.memory_space<vmem>>, %arg2: memref<8x8xf32, #tpu.memory_space<vmem>>, %arg3: memref<8x8xf32, #tpu.memory_space<vmem>>, %arg4: memref<8x8xf32, #tpu.memory_space<vmem>>, %arg5: memref<8x8xf32, #tpu.memory_space<vmem>>, %arg6: memref<1x8xf32, #tpu.memory_space<vmem>>, %arg7: memref<1x8xf32, #tpu.memory_space<vmem>>, %arg8: memref<1x8xf32, #tpu.memory_space<vmem>>, %arg9: memref<8x384xf32, #tpu.memory_space<vmem>>, %arg10: memref<8x384xf32, #tpu.memory_space<vmem>>, %arg11: memref<8x384xf32, #tpu.memory_space<vmem>>, %arg12: memref<1x384xf32, #tpu.memory_space<vmem>>, %arg13: memref<128x256xf32, #tpu.memory_space<vmem>>, %arg14: memref<1x256xf32, #tpu.memory_space<vmem>>, %arg15: memref<1x128xf32, #tpu.memory_space<vmem>>, %arg16: memref<8x768xbf16, #tpu.memory_space<vmem>>, %arg17: memref<8x768xbf16, #tpu.memory_space<vmem>>, %arg18: memref<768x128xbf16, #tpu.memory_space<vmem>>, %arg19: memref<768x128xbf16, #tpu.memory_space<vmem>>, %arg20: memref<8x768xf32, #tpu.memory_space<vmem>>, %arg21: memref<8x768xf32, #tpu.memory_space<vmem>>, %arg22: memref<8x768xbf16, #tpu.memory_space<vmem>>, %arg23: memref<8x768xbf16, #tpu.memory_space<vmem>>, %arg24: memref<1x768xf32, #tpu.memory_space<vmem>>, %arg25: memref<1x768xf32, #tpu.memory_space<vmem>>, %arg26: memref<8x8xf32, #tpu.memory_space<vmem>>, %arg27: memref<8x8xf32, #tpu.memory_space<vmem>>, %arg28: memref<8x768xbf16, #tpu.memory_space<vmem>>, %arg29: memref<8x768xbf16, #tpu.memory_space<vmem>>, %arg30: memref<1x4xf32, #tpu.memory_space<smem>>) attributes {dimension_semantics = [], scalar_prefetch = 0 : i64, scratch_operands = 0 : i64, tpu.core_type = #tpu.core_type<tc>} {
    %c0 = arith.constant 0 : index
    %c0_0 = arith.constant 0 : index
    %0 = memref.load %arg0[%c0, %c0_0] : memref<1x2xf32, #tpu.memory_space<smem>>
    %c0_1 = arith.constant 0 : index
    %c1 = arith.constant 1 : index
    %1 = memref.load %arg0[%c0_1, %c1] : memref<1x2xf32, #tpu.memory_space<smem>>
    %c0_2 = arith.constant 0 : index
    %c0_3 = arith.constant 0 : index
    %2 = vector.load %arg1[%c0_2, %c0_3] : memref<8x8xf32, #tpu.memory_space<vmem>>, vector<8x8xf32>
    %c0_4 = arith.constant 0 : index
    %c0_5 = arith.constant 0 : index
    %3 = vector.load %arg3[%c0_4, %c0_5] : memref<8x8xf32, #tpu.memory_space<vmem>>, vector<8x8xf32>
    %c0_6 = arith.constant 0 : index
    %c0_7 = arith.constant 0 : index
    %4 = vector.load %arg2[%c0_6, %c0_7] : memref<8x8xf32, #tpu.memory_space<vmem>>, vector<8x8xf32>
    %5 = arith.subf %2, %4 : vector<8x8xf32>
    %6 = vector.broadcast %1 : f32 to vector<8x8xf32>
    %7 = arith.mulf %5, %6 : vector<8x8xf32>
    %c0_8 = arith.constant 0 : index
    %c0_9 = arith.constant 0 : index
    %8 = vector.load %arg9[%c0_8, %c0_9] : memref<8x384xf32, #tpu.memory_space<vmem>>, vector<8x384xf32>
    %cst = arith.constant dense<0.000000e+00> : vector<8x384xf32>
    %9 = tpu.matmul %2, %8, %cst {dimension_numbers = #tpu.dot_dimension_numbers<[1], [0], [0], [1], [0, 0, 1, 1], [], []>} : vector<8x8xf32>, vector<8x384xf32>, vector<8x384xf32> -> vector<8x384xf32>
    %c0_10 = arith.constant 0 : index
    %c0_11 = arith.constant 0 : index
    %10 = vector.load %arg10[%c0_10, %c0_11] : memref<8x384xf32, #tpu.memory_space<vmem>>, vector<8x384xf32>
    %cst_12 = arith.constant dense<0.000000e+00> : vector<8x384xf32>
    %11 = tpu.matmul %7, %10, %cst_12 {dimension_numbers = #tpu.dot_dimension_numbers<[1], [0], [0], [1], [0, 0, 1, 1], [], []>} : vector<8x8xf32>, vector<8x384xf32>, vector<8x384xf32> -> vector<8x384xf32>
    %12 = arith.addf %9, %11 : vector<8x384xf32>
    %c0_13 = arith.constant 0 : index
    %c0_14 = arith.constant 0 : index
    %13 = vector.load %arg11[%c0_13, %c0_14] : memref<8x384xf32, #tpu.memory_space<vmem>>, vector<8x384xf32>
    %cst_15 = arith.constant dense<0.000000e+00> : vector<8x384xf32>
    %14 = tpu.matmul %3, %13, %cst_15 {dimension_numbers = #tpu.dot_dimension_numbers<[1], [0], [0], [1], [0, 0, 1, 1], [], []>} : vector<8x8xf32>, vector<8x384xf32>, vector<8x384xf32> -> vector<8x384xf32>
    %15 = arith.addf %12, %14 : vector<8x384xf32>
    %c0_16 = arith.constant 0 : index
    %c0_17 = arith.constant 0 : index
    %16 = vector.load %arg12[%c0_16, %c0_17] : memref<1x384xf32, #tpu.memory_space<vmem>>, vector<1x384xf32>
    %17 = vector.broadcast %16 : vector<1x384xf32> to vector<8x384xf32>
    %18 = arith.addf %15, %17 : vector<8x384xf32>
    %19 = vector.extract_strided_slice %18 {offsets = [0, 0], sizes = [8, 8], strides = [1, 1]} : vector<8x384xf32> to vector<8x8xf32>
    %20 = vector.extract_strided_slice %18 {offsets = [0, 128], sizes = [8, 8], strides = [1, 1]} : vector<8x384xf32> to vector<8x8xf32>
    %cst_18 = arith.constant 0.000000e+00 : f32
    %21 = vector.broadcast %cst_18 : f32 to vector<8x8xf32>
    %22 = arith.maximumf %20, %21 : vector<8x8xf32>
    %23 = math.absf %20 : vector<8x8xf32>
    %cst_19 = arith.constant 0.000000e+00 : f32
    %24 = vector.broadcast %cst_19 : f32 to vector<8x8xf32>
    %25 = arith.subf %24, %23 : vector<8x8xf32>
    %26 = math.exp %25 : vector<8x8xf32>
    %27 = math.log1p %26 : vector<8x8xf32>
    %28 = arith.addf %22, %27 : vector<8x8xf32>
    %cst_20 = arith.constant 0.000000e+00 : f32
    %29 = vector.broadcast %cst_20 : f32 to vector<8x8xf32>
    %30 = arith.subf %29, %28 : vector<8x8xf32>
    %31 = vector.extract_strided_slice %18 {offsets = [0, 256], sizes = [8, 8], strides = [1, 1]} : vector<8x384xf32> to vector<8x8xf32>
    %cst_21 = arith.constant 0.000000e+00 : f32
    %32 = vector.broadcast %cst_21 : f32 to vector<8x8xf32>
    %33 = arith.maximumf %31, %32 : vector<8x8xf32>
    %34 = math.absf %31 : vector<8x8xf32>
    %cst_22 = arith.constant 0.000000e+00 : f32
    %35 = vector.broadcast %cst_22 : f32 to vector<8x8xf32>
    %36 = arith.subf %35, %34 : vector<8x8xf32>
    %37 = math.exp %36 : vector<8x8xf32>
    %38 = math.log1p %37 : vector<8x8xf32>
    %39 = arith.addf %33, %38 : vector<8x8xf32>
    %40 = arith.mulf %19, %2 : vector<8x8xf32>
    %41 = arith.mulf %30, %7 : vector<8x8xf32>
    %42 = arith.addf %40, %41 : vector<8x8xf32>
    %43 = arith.mulf %39, %3 : vector<8x8xf32>
    %44 = arith.addf %42, %43 : vector<8x8xf32>
    %45 = vector.broadcast %0 : f32 to vector<8x8xf32>
    %46 = arith.mulf %45, %44 : vector<8x8xf32>
    %47 = arith.addf %7, %46 : vector<8x8xf32>
    %c0_23 = arith.constant 0 : index
    %c0_24 = arith.constant 0 : index
    %48 = vector.load %arg26[%c0_23, %c0_24] : memref<8x8xf32, #tpu.memory_space<vmem>>, vector<8x8xf32>
    tpu.vector_store %arg26[%c0_23, %c0_24], %47 {strides = array<i32>} : memref<8x8xf32, #tpu.memory_space<vmem>>, vector<8x8xf32>,
    %49 = vector.broadcast %0 : f32 to vector<8x8xf32>
    %50 = arith.mulf %47, %49 : vector<8x8xf32>
    %51 = arith.addf %2, %50 : vector<8x8xf32>
    %c0_25 = arith.constant 0 : index
    %c0_26 = arith.constant 0 : index
    %52 = vector.load %arg7[%c0_25, %c0_26] : memref<1x8xf32, #tpu.memory_space<vmem>>, vector<1x8xf32>
    %c0_27 = arith.constant 0 : index
    %c0_28 = arith.constant 0 : index
    %53 = vector.load %arg4[%c0_27, %c0_28] : memref<8x8xf32, #tpu.memory_space<vmem>>, vector<8x8xf32>
    %54 = vector.broadcast %52 : vector<1x8xf32> to vector<8x8xf32>
    %55 = arith.mulf %54, %53 : vector<8x8xf32>
    %56 = arith.addf %51, %55 : vector<8x8xf32>
    %c0_29 = arith.constant 0 : index
    %c0_30 = arith.constant 0 : index
    %57 = vector.load %arg16[%c0_29, %c0_30] : memref<8x768xbf16, #tpu.memory_space<vmem>>, vector<8x768xbf16>
    %c0_31 = arith.constant 0 : index
    %c0_32 = arith.constant 0 : index
    %58 = vector.load %arg18[%c0_31, %c0_32] : memref<768x128xbf16, #tpu.memory_space<vmem>>, vector<768x128xbf16>
    %cst_33 = arith.constant dense<0.000000e+00> : vector<8x128xf32>
    %59 = tpu.matmul %57, %58, %cst_33 {dimension_numbers = #tpu.dot_dimension_numbers<[1], [0], [0], [1], [0, 0, 1, 1], [], []>} : vector<8x768xbf16>, vector<768x128xbf16>, vector<8x128xf32> -> vector<8x128xf32>
    %c0_34 = arith.constant 0 : index
    %c0_35 = arith.constant 0 : index
    %60 = vector.load %arg17[%c0_34, %c0_35] : memref<8x768xbf16, #tpu.memory_space<vmem>>, vector<8x768xbf16>
    %c0_36 = arith.constant 0 : index
    %c0_37 = arith.constant 0 : index
    %61 = vector.load %arg19[%c0_36, %c0_37] : memref<768x128xbf16, #tpu.memory_space<vmem>>, vector<768x128xbf16>
    %cst_38 = arith.constant dense<0.000000e+00> : vector<8x128xf32>
    %62 = tpu.matmul %60, %61, %cst_38 {dimension_numbers = #tpu.dot_dimension_numbers<[1], [0], [0], [1], [0, 0, 1, 1], [], []>} : vector<8x768xbf16>, vector<768x128xbf16>, vector<8x128xf32> -> vector<8x128xf32>
    %63 = arith.addf %59, %62 : vector<8x128xf32>
    %c0_39 = arith.constant 0 : index
    %c0_40 = arith.constant 0 : index
    %64 = vector.load %arg15[%c0_39, %c0_40] : memref<1x128xf32, #tpu.memory_space<vmem>>, vector<1x128xf32>
    %65 = vector.broadcast %64 : vector<1x128xf32> to vector<8x128xf32>
    %66 = arith.addf %63, %65 : vector<8x128xf32>
    %cst_41 = arith.constant 0.000000e+00 : f32
    %67 = vector.broadcast %cst_41 : f32 to vector<8x128xf32>
    %68 = arith.maximumf %66, %67 : vector<8x128xf32>
    %c0_42 = arith.constant 0 : index
    %c0_43 = arith.constant 0 : index
    %69 = vector.load %arg13[%c0_42, %c0_43] : memref<128x256xf32, #tpu.memory_space<vmem>>, vector<128x256xf32>
    %cst_44 = arith.constant dense<0.000000e+00> : vector<8x256xf32>
    %70 = tpu.matmul %68, %69, %cst_44 {dimension_numbers = #tpu.dot_dimension_numbers<[1], [0], [0], [1], [0, 0, 1, 1], [], []>} : vector<8x128xf32>, vector<128x256xf32>, vector<8x256xf32> -> vector<8x256xf32>
    %c0_45 = arith.constant 0 : index
    %c0_46 = arith.constant 0 : index
    %71 = vector.load %arg14[%c0_45, %c0_46] : memref<1x256xf32, #tpu.memory_space<vmem>>, vector<1x256xf32>
    %72 = vector.broadcast %71 : vector<1x256xf32> to vector<8x256xf32>
    %73 = arith.addf %70, %72 : vector<8x256xf32>
    %74 = vector.extract_strided_slice %73 {offsets = [0, 0], sizes = [8, 8], strides = [1, 1]} : vector<8x256xf32> to vector<8x8xf32>
    %75 = vector.extract_strided_slice %73 {offsets = [0, 128], sizes = [8, 8], strides = [1, 1]} : vector<8x256xf32> to vector<8x8xf32>
    %cst_47 = arith.constant 0.000000e+00 : f32
    %76 = vector.broadcast %cst_47 : f32 to vector<8x8xf32>
    %77 = arith.maximumf %75, %76 : vector<8x8xf32>
    %78 = math.absf %75 : vector<8x8xf32>
    %cst_48 = arith.constant 0.000000e+00 : f32
    %79 = vector.broadcast %cst_48 : f32 to vector<8x8xf32>
    %80 = arith.subf %79, %78 : vector<8x8xf32>
    %81 = math.exp %80 : vector<8x8xf32>
    %82 = math.log1p %81 : vector<8x8xf32>
    %83 = arith.addf %77, %82 : vector<8x8xf32>
    %c0_49 = arith.constant 0 : index
    %c0_50 = arith.constant 0 : index
    %84 = vector.load %arg5[%c0_49, %c0_50] : memref<8x8xf32, #tpu.memory_space<vmem>>, vector<8x8xf32>
    %85 = arith.mulf %83, %84 : vector<8x8xf32>
    %86 = arith.addf %74, %85 : vector<8x8xf32>
    %c0_51 = arith.constant 0 : index
    %c0_52 = arith.constant 0 : index
    %87 = vector.load %arg27[%c0_51, %c0_52] : memref<8x8xf32, #tpu.memory_space<vmem>>, vector<8x8xf32>
    tpu.vector_store %arg27[%c0_51, %c0_52], %86 {strides = array<i32>} : memref<8x8xf32, #tpu.memory_space<vmem>>, vector<8x8xf32>,
    %88 = arith.truncf %56 : vector<8x8xf32> to vector<8x8xbf16>
    %c0_53 = arith.constant 0 : index
    %c0_54 = arith.constant 0 : index
    %89 = vector.load %arg22[%c0_53, %c0_54] : memref<8x768xbf16, #tpu.memory_space<vmem>>, vector<8x768xbf16>
    %cst_55 = arith.constant dense<0.000000e+00> : vector<8x768xf32>
    %90 = tpu.matmul %88, %89, %cst_55 {dimension_numbers = #tpu.dot_dimension_numbers<[1], [0], [0], [1], [0, 0, 1, 1], [], []>} : vector<8x8xbf16>, vector<8x768xbf16>, vector<8x768xf32> -> vector<8x768xf32>
    %c0_56 = arith.constant 0 : index
    %c0_57 = arith.constant 0 : index
    %91 = vector.load %arg24[%c0_56, %c0_57] : memref<1x768xf32, #tpu.memory_space<vmem>>, vector<1x768xf32>
    %92 = vector.broadcast %91 : vector<1x768xf32> to vector<8x768xf32>
    %93 = arith.addf %90, %92 : vector<8x768xf32>
    %c0_58 = arith.constant 0 : index
    %c0_59 = arith.constant 0 : index
    %94 = vector.load %arg20[%c0_58, %c0_59] : memref<8x768xf32, #tpu.memory_space<vmem>>, vector<8x768xf32>
    %95 = arith.subf %93, %94 : vector<8x768xf32>
    %96 = arith.mulf %95, %95 : vector<8x768xf32>
    %97 = vector.shape_cast %96 : vector<8x768xf32> to vector<1x8x768xf32>
    %cst_60 = arith.constant dense<0.000000e+00> : vector<1xf32>
    %98 = vector.multi_reduction <add>, %97, %cst_60 [1, 2] : vector<1x8x768xf32> to vector<1xf32>
    %99 = vector.shape_cast %98 : vector<1xf32> to vector<1x1x1xf32>
    %100 = vector.extract %99[0, 0, 0] : f32 from vector<1x1x1xf32>
    %cst_61 = arith.constant 1.250000e-01 : f32
    %101 = arith.mulf %100, %cst_61 : f32
    %c0_62 = arith.constant 0 : index
    %c0_63 = arith.constant 0 : index
    %102 = memref.load %arg30[%c0_62, %c0_63] : memref<1x4xf32, #tpu.memory_space<smem>>
    memref.store %101, %arg30[%c0_62, %c0_63] : memref<1x4xf32, #tpu.memory_space<smem>>
    %103 = arith.truncf %93 : vector<8x768xf32> to vector<8x768xbf16>
    %c0_64 = arith.constant 0 : index
    %c0_65 = arith.constant 0 : index
    %104 = vector.load %arg28[%c0_64, %c0_65] : memref<8x768xbf16, #tpu.memory_space<vmem>>, vector<8x768xbf16>
    tpu.vector_store %arg28[%c0_64, %c0_65], %103 {strides = array<i32>} : memref<8x768xbf16, #tpu.memory_space<vmem>>, vector<8x768xbf16>,
    %c0_66 = arith.constant 0 : index
    %c0_67 = arith.constant 0 : index
    %105 = vector.load %arg23[%c0_66, %c0_67] : memref<8x768xbf16, #tpu.memory_space<vmem>>, vector<8x768xbf16>
    %cst_68 = arith.constant dense<0.000000e+00> : vector<8x768xf32>
    %106 = tpu.matmul %88, %105, %cst_68 {dimension_numbers = #tpu.dot_dimension_numbers<[1], [0], [0], [1], [0, 0, 1, 1], [], []>} : vector<8x8xbf16>, vector<8x768xbf16>, vector<8x768xf32> -> vector<8x768xf32>
    %c0_69 = arith.constant 0 : index
    %c0_70 = arith.constant 0 : index
    %107 = vector.load %arg25[%c0_69, %c0_70] : memref<1x768xf32, #tpu.memory_space<vmem>>, vector<1x768xf32>
    %108 = vector.broadcast %107 : vector<1x768xf32> to vector<8x768xf32>
    %109 = arith.addf %106, %108 : vector<8x768xf32>
    %c0_71 = arith.constant 0 : index
    %c0_72 = arith.constant 0 : index
    %110 = vector.load %arg21[%c0_71, %c0_72] : memref<8x768xf32, #tpu.memory_space<vmem>>, vector<8x768xf32>
    %111 = arith.subf %109, %110 : vector<8x768xf32>
    %112 = arith.mulf %111, %111 : vector<8x768xf32>
    %113 = vector.shape_cast %112 : vector<8x768xf32> to vector<1x8x768xf32>
    %cst_73 = arith.constant dense<0.000000e+00> : vector<1xf32>
    %114 = vector.multi_reduction <add>, %113, %cst_73 [1, 2] : vector<1x8x768xf32> to vector<1xf32>
    %115 = vector.shape_cast %114 : vector<1xf32> to vector<1x1x1xf32>
    %116 = vector.extract %115[0, 0, 0] : f32 from vector<1x1x1xf32>
    %cst_74 = arith.constant 1.250000e-01 : f32
    %117 = arith.mulf %116, %cst_74 : f32
    %c0_75 = arith.constant 0 : index
    %c1_76 = arith.constant 1 : index
    %118 = memref.load %arg30[%c0_75, %c1_76] : memref<1x4xf32, #tpu.memory_space<smem>>
    memref.store %117, %arg30[%c0_75, %c1_76] : memref<1x4xf32, #tpu.memory_space<smem>>
    %119 = arith.truncf %109 : vector<8x768xf32> to vector<8x768xbf16>
    %c0_77 = arith.constant 0 : index
    %c0_78 = arith.constant 0 : index
    %120 = vector.load %arg29[%c0_77, %c0_78] : memref<8x768xbf16, #tpu.memory_space<vmem>>, vector<8x768xbf16>
    tpu.vector_store %arg29[%c0_77, %c0_78], %119 {strides = array<i32>} : memref<8x768xbf16, #tpu.memory_space<vmem>>, vector<8x768xbf16>,
    %121 = math.log %83 : vector<8x8xf32>
    %122 = arith.mulf %83, %83 : vector<8x8xf32>
    %123 = arith.subf %74, %51 : vector<8x8xf32>
    %c0_79 = arith.constant 0 : index
    %c0_80 = arith.constant 0 : index
    %124 = vector.load %arg6[%c0_79, %c0_80] : memref<1x8xf32, #tpu.memory_space<vmem>>, vector<1x8xf32>
    %125 = vector.broadcast %124 : vector<1x8xf32> to vector<8x8xf32>
    %126 = arith.subf %125, %121 : vector<8x8xf32>
    %127 = arith.mulf %123, %123 : vector<8x8xf32>
    %128 = arith.addf %122, %127 : vector<8x8xf32>
    %c0_81 = arith.constant 0 : index
    %c0_82 = arith.constant 0 : index
    %129 = vector.load %arg8[%c0_81, %c0_82] : memref<1x8xf32, #tpu.memory_space<vmem>>, vector<1x8xf32>
    %130 = vector.broadcast %129 : vector<1x8xf32> to vector<8x8xf32>
    %131 = arith.mulf %128, %130 : vector<8x8xf32>
    %132 = arith.addf %126, %131 : vector<8x8xf32>
    %cst_83 = arith.constant 5.000000e-01 : f32
    %133 = vector.broadcast %cst_83 : f32 to vector<8x8xf32>
    %134 = arith.subf %132, %133 : vector<8x8xf32>
    %135 = vector.shape_cast %134 : vector<8x8xf32> to vector<1x8x8xf32>
    %cst_84 = arith.constant dense<0.000000e+00> : vector<1xf32>
    %136 = vector.multi_reduction <add>, %135, %cst_84 [1, 2] : vector<1x8x8xf32> to vector<1xf32>
    %137 = vector.shape_cast %136 : vector<1xf32> to vector<1x1x1xf32>
    %138 = vector.extract %137[0, 0, 0] : f32 from vector<1x1x1xf32>
    %cst_85 = arith.constant 1.250000e-01 : f32
    %139 = arith.mulf %138, %cst_85 : f32
    %c0_86 = arith.constant 0 : index
    %c2 = arith.constant 2 : index
    %140 = memref.load %arg30[%c0_86, %c2] : memref<1x4xf32, #tpu.memory_space<smem>>
    memref.store %139, %arg30[%c0_86, %c2] : memref<1x4xf32, #tpu.memory_space<smem>>
    %cst_87 = arith.constant 0.000000e+00 : f32
    %141 = vector.broadcast %cst_87 : f32 to vector<8x8xf32>
    %142 = arith.subf %141, %121 : vector<8x8xf32>
    %143 = arith.mulf %74, %74 : vector<8x8xf32>
    %144 = arith.addf %122, %143 : vector<8x8xf32>
    %cst_88 = arith.constant 5.000000e-01 : f32
    %145 = vector.broadcast %cst_88 : f32 to vector<8x8xf32>
    %146 = arith.mulf %145, %144 : vector<8x8xf32>
    %147 = arith.addf %142, %146 : vector<8x8xf32>
    %cst_89 = arith.constant 5.000000e-01 : f32
    %148 = vector.broadcast %cst_89 : f32 to vector<8x8xf32>
    %149 = arith.subf %147, %148 : vector<8x8xf32>
    %150 = vector.shape_cast %149 : vector<8x8xf32> to vector<1x8x8xf32>
    %cst_90 = arith.constant dense<0.000000e+00> : vector<1xf32>
    %151 = vector.multi_reduction <add>, %150, %cst_90 [1, 2] : vector<1x8x8xf32> to vector<1xf32>
    %152 = vector.shape_cast %151 : vector<1xf32> to vector<1x1x1xf32>
    %153 = vector.extract %152[0, 0, 0] : f32 from vector<1x1x1xf32>
    %cst_91 = arith.constant 1.250000e-01 : f32
    %154 = arith.mulf %153, %cst_91 : f32
    %c0_92 = arith.constant 0 : index
    %c3 = arith.constant 3 : index
    %155 = memref.load %arg30[%c0_92, %c3] : memref<1x4xf32, #tpu.memory_space<smem>>
    memref.store %154, %arg30[%c0_92, %c3] : memref<1x4xf32, #tpu.memory_space<smem>>
    return
  }
}

</mosaic_0001>

<bundles_post_ra>
// kernel: tpu_custom_call.1
= control target key start
LH: loop header
LB: loop body
LE: loop exit
PB: predicated region body
PF: predicated region fallthrough
CT: control target
= control target key end

     0   :  { %s3886_s6 = smov 1   ;;  %s3887_s10 = smov 2   ;;  %s4260_s0 = inlined_call_operand.smem [shape: u32[31], index: -1, kind: input, shape index: {}] }
   0x1   :  { %s3959_s5 = sld [smem:[%s4260_s0]]   ;;  %s3888_s14 = smov 3  }
   0x2   :  { %s3964_s9 = sld [smem:[%s4260_s0 + %s3886_s6]]   ;;  %s3889_s18 = smov 4  }
   0x3   :  { %s3969_s13 = sld [smem:[%s4260_s0 + %s3887_s10]]   ;;  %s3890_s22 = smov 5  }
   0x4   :  { %s3974_s17 = sld [smem:[%s4260_s0 + %s3888_s14]]   ;;  %s3891_s26 = smov 6  }
   0x5   :  { %s3979_s21 = sld [smem:[%s4260_s0 + %s3889_s18]]   ;;  %s3892_s30 = smov 7  }
   0x6   :  { %s3984_s25 = sld [smem:[%s4260_s0 + %s3890_s22]]   ;;  %s3893_s4 = smov 8  }
   0x7   :  { %s3989_s29 = sld [smem:[%s4260_s0 + %s3891_s26]]   ;;  %s3894_s10 = smov 9  }
   0x8   :  { %s3994_s3 = sld [smem:[%s4260_s0 + %s3892_s30]]   ;;  %s3895_s15 = smov 10  }
   0x9   :  { %s3999_s8 = sld [smem:[%s4260_s0 + %s3893_s4]]   ;;  %s3896_s20 = smov 11  }
   0xa   :  { %s4004_s14 = sld [smem:[%s4260_s0 + %s3894_s10]]   ;;  %s3897_s26 = smov 12  }
   0xb   :  { %s4009_s19 = sld [smem:[%s4260_s0 + %s3895_s15]]   ;;  %s3898_s1 = smov 13  }
   0xc   :  { %s4014_s24 = sld [smem:[%s4260_s0 + %s3896_s20]]   ;;  %s3899_s7 = smov 14  }
   0xd   :  { %s4019_s30 = sld [smem:[%s4260_s0 + %s3897_s26]]   ;;  %s3900_s15 = smov 15  }
   0xe   :  { %4262 = sst [smem:[#allocation64_spill]] %s3994_s3  ;;  %s3901_s22 = smov 16  }
   0xf   :  { %s4024_s6 = sld [smem:[%s4260_s0 + %s3898_s1]]   ;;  %s3902_s28 = smov 17  }
  0x10   :  { %4263 = sst [smem:[#allocation65_spill]] %s4004_s14 }
  0x11   :  { %s4029_s12 = sld [smem:[%s4260_s0 + %s3899_s7]]   ;;  %s3903_s7 = smov 18  }
  0x12   :  { %4264 = sst [smem:[#allocation66_spill]] %s4014_s24 }
  0x13   :  { %s4034_s20 = sld [smem:[%s4260_s0 + %s3900_s15]]   ;;  %s3904_s15 = smov 19  }
  0x14   :  { %s4039_s27 = sld [smem:[%s4260_s0 + %s3901_s22]]   ;;  %s3905_s22 = smov 20  }
  0x15   :  { %4265 = sst [smem:[#allocation67_spill]] %s4024_s6 }
  0x16   :  { %s4044_s4 = sld [smem:[%s4260_s0 + %s3902_s28]]   ;;  %s3906_s28 = smov 21  }
  0x17   :  { %s4049_s6 = sld [smem:[%s4260_s0 + %s3903_s7]]   ;;  %s3907_s7 = smov 22  }
  0x18   :  { %s4064_s24 = sld [smem:[%s4260_s0 + %s3906_s28]]   ;;  %s3910_s28 = smov 25  }
  0x19   :  { %4266 = sst [smem:[#allocation68_spill]] %s4034_s20 }
  0x1a   :  { %4267 = sst [smem:[#allocation69_spill]] %s4039_s27 }
  0x1b   :  { %s4054_s20 = sld [smem:[%s4260_s0 + %s3904_s15]]   ;;  %s3908_s15 = smov 23  }
  0x1c   :  { %s4059_s27 = sld [smem:[%s4260_s0 + %s3905_s22]]   ;;  %s3909_s22 = smov 24  }
  0x1d   :  { %4268 = sst [smem:[#allocation70_spill]] %s4049_s6 }
  0x1e   :  { %s4069_s6 = sld [smem:[%s4260_s0 + %s3907_s7]]   ;;  %s3911_s7 = smov 26  }
  0x1f   :  { %s4074_s14 = sld [smem:[%s4260_s0 + %s3908_s15]]   ;;  %s3912_s15 = smov 27  }
  0x20   :  { %s4084_s3 = sld [smem:[%s4260_s0 + %s3910_s28]]   ;;  %s3914_s28 = smov 29  }
  0x22   :  { %4269 = sst [smem:[#allocation71_spill]] %s4059_s27 }
  0x23   :  { %s4079_s27 = sld [smem:[%s4260_s0 + %s3909_s22]]   ;;  %s3913_s22 = smov 28  }
  0x24   :  { %4270 = sst [smem:[#allocation72_spill]] %s4069_s6 }
  0x25   :  { %4271 = sst [smem:[#allocation73_spill]] %s4074_s14 }
  0x26   :  { %4273 = sst [smem:[#allocation75_spill]] %s4084_s3 }
  0x27   :  { %s4089_s6 = sld [smem:[%s4260_s0 + %s3911_s7]]   ;;  %s3915_s7 = smov 30  }
  0x28   :  { %s4094_s14 = sld [smem:[%s4260_s0 + %s3912_s15]]  }
  0x29   :  { %4272 = sst [smem:[#allocation74_spill]] %s4079_s27 }
  0x2a   :  { %s4099_s27 = sld [smem:[%s4260_s0 + %s3913_s22]]  }
  0x2b   :  { %s4104_s3 = sld [smem:[%s4260_s0 + %s3914_s28]]  }
  0x2d   :  { %4274 = sst [smem:[#allocation76_spill]] %s4089_s6 }
  0x2e   :  { %s4109_s6 = sld [smem:[%s4260_s0 + %s3915_s7]]  }
  0x2f   :  { %67 = vsyncpa [#allocation5], 0 }
  0x30   :  { %68 = vsyncpa [#allocation3], 0 }
  0x31   :  { %69 = vsyncpa [#allocation9], 0 }
  0x32   :  { %70 = vsyncpa [#allocation12], 0 }
  0x33   :  { %71 = vsyncpa [#allocation15], 0 }
  0x34   :  { %72 = vsyncpa [#allocation18], 0 }
  0x35   :  { %73 = vsyncpa [#allocation21], 0 }
  0x36   :  { %74 = vsyncpa [#allocation24], 0 }
  0x37   :  { %75 = vsyncpa [#allocation27], 0 }
  0x38   :  { %76 = vsyncpa [#allocation30], 0 }
  0x39   :  { %77 = vsyncpa [#allocation33], 0 }
  0x3a   :  { %78 = vsyncpa [#allocation36], 0 }
  0x3b   :  { %79 = vsyncpa [#allocation39], 0 }
  0x3c   :  { %80 = vsyncpa [#allocation4], 0 }
  0x3d   :  { %81 = vsyncpa [#allocation42], 0 }
  0x3e   :  { %82 = vsyncpa [#allocation45], 0 }
  0x3f   :  { %83 = vsyncpa [#allocation6], 0  ;;  %s3916_s15 = smov [#allocation8]   ;;  %s3917_s16 = smov [#allocation11]  }
  0x40   :  { %s108_s0 = sshll.u32 %s3916_s15, 4  ;;  %s128_s18 = sshll.u32 %s3917_s16, 4  ;;  %s109_s0 = int_to_ptr.vmem [resolvable:$true] %s108_s0  ;;  %s129_s18 = int_to_ptr.vmem [resolvable:$true] %s128_s18 }
  0x41   :  { %s3324_s22 = scalar_lea.vmem %s109_s0, 128  ;;  %p3329_p1 = scmp.lt.s32.totalorder %s109_s0, %s109_s0 }
  0x42   :  { %p3325_p0 = scmp.ne.s32.totalorder %s109_s0, %s3324_s22  ;;  %p3330_p2 = scmp.lt.s32.totalorder %s3324_s22, %s3324_s22 }
  0x44   :  { %p3331_p3 = por %p3330_p2, %p3329_p1 }
  0x46   :  { %p3332_p4 = pnand %p3331_p3, %p3325_p0 }
  0x48   :  { %3335 = shalt.err (!%p3332_p4)
}
  0x49   :  { %111 = dma.hbm_to_vmem [thread:$0]  %s3969_s13, 128, %s109_s0, [#allocation9]  }
  0x4a   :  { %s3344_s23 = scalar_lea.vmem %s129_s18, 128  ;;  %p3349_p6 = scmp.lt.s32.totalorder %s129_s18, %s129_s18 }
  0x4b   :  { %p3345_p5 = scmp.ne.s32.totalorder %s129_s18, %s3344_s23  ;;  %p3350_p7 = scmp.lt.s32.totalorder %s3344_s23, %s3344_s23 }
  0x4d   :  { %p3351_p8 = por %p3350_p7, %p3349_p6 }
  0x4f   :  { %p3352_p9 = pnand %p3351_p8, %p3345_p5 }
  0x51   :  { %3355 = shalt.err (!%p3352_p9)
}
  0x52   :  { %131 = dma.hbm_to_vmem [thread:$0]  %s3979_s21, 128, %s129_s18, [#allocation12]  }
  0x53   :  { %s3918_s26 = smov [#allocation14]   ;;  %s3919_s1 = smov [#allocation17]  }
  0x54   :  { %s148_s28 = sshll.u32 %s3918_s26, 4  ;;  %s168_s2 = sshll.u32 %s3919_s1, 4  ;;  %s149_s28 = int_to_ptr.vmem [resolvable:$true] %s148_s28  ;;  %s169_s2 = int_to_ptr.vmem [resolvable:$true] %s168_s2 }
  0x55   :  { %s3364_s7 = scalar_lea.vmem %s149_s28, 16  ;;  %s3368_s10 = scalar_lea.vmem %s149_s28, 32 }
  0x56   :  { %p3365_p10 = scmp.ne.s32.totalorder %s149_s28, %s3364_s7  ;;  %p3369_p11 = scmp.lt.s32.totalorder %s149_s28, %s149_s28 }
  0x57   :  { %p3370_p12 = scmp.lt.s32.totalorder %s3368_s10, %s3364_s7 }
  0x59   :  { %p3371_p13 = por %p3370_p12, %p3369_p11 }
  0x5b   :  { %p3372_p0 = pnand %p3371_p13, %p3365_p10 }
  0x5d   :  { %3375 = shalt.err (!%p3372_p0)
}
  0x5e   :  { %151 = dma.hbm_to_vmem [thread:$0]  %s3989_s29, 16, %s149_s28, [#allocation15]  }
  0x5f   :  { %s3384_s13 = scalar_lea.vmem %s169_s2, 16  ;;  %s3388_s11 = scalar_lea.vmem %s169_s2, 32 }
  0x60   :  { %p3385_p1 = scmp.ne.s32.totalorder %s169_s2, %s3384_s13  ;;  %p3389_p2 = scmp.lt.s32.totalorder %s169_s2, %s169_s2 }
  0x61   :  { %p3390_p3 = scmp.lt.s32.totalorder %s3388_s11, %s3384_s13 }
  0x63   :  { %p3391_p4 = por %p3390_p3, %p3389_p2 }
  0x65   :  { %p3392_p5 = pnand %p3391_p4, %p3385_p1 }
  0x67   :  { %3395 = shalt.err (!%p3392_p5)
}
  0x68   :  { %171 = dma.hbm_to_vmem [thread:$0]  %s3999_s8, 16, %s169_s2, [#allocation18]  }
  0x69   :  { %s3920_s21 = smov [#allocation20]   ;;  %s3921_s0 = smov [#allocation23]  }
  0x6a   :  { %s188_s15 = sshll.u32 %s3920_s21, 4  ;;  %s208_s16 = sshll.u32 %s3921_s0, 4  ;;  %s189_s15 = int_to_ptr.vmem [resolvable:$true] %s188_s15  ;;  %s209_s16 = int_to_ptr.vmem [resolvable:$true] %s208_s16 }
  0x6b   :  { %s3404_s18 = scalar_lea.vmem %s189_s15, 384  ;;  %p3409_p7 = scmp.lt.s32.totalorder %s189_s15, %s189_s15 }
  0x6c   :  { %p3405_p6 = scmp.ne.s32.totalorder %s189_s15, %s3404_s18  ;;  %p3410_p8 = scmp.lt.s32.totalorder %s3404_s18, %s3404_s18 }
  0x6e   :  { %p3411_p9 = por %p3410_p8, %p3409_p7 }
  0x70   :  { %p3412_p10 = pnand %p3411_p9, %p3405_p6 }
  0x72   :  { %3415 = shalt.err (!%p3412_p10)
}
  0x73   :  { %191 = dma.hbm_to_vmem [thread:$0]  %s4009_s19, 384, %s189_s15, [#allocation21]  }
  0x74   :  { %s3424_s29 = scalar_lea.vmem %s209_s16, 48  ;;  %s3428_s22 = scalar_lea.vmem %s209_s16, 64 }
  0x75   :  { %p3425_p11 = scmp.ne.s32.totalorder %s209_s16, %s3424_s29  ;;  %p3429_p12 = scmp.lt.s32.totalorder %s209_s16, %s209_s16 }
  0x76   :  { %p3430_p13 = scmp.lt.s32.totalorder %s3428_s22, %s3424_s29 }
  0x78   :  { %p3431_p0 = por %p3430_p13, %p3429_p12 }
  0x7a   :  { %p3432_p1 = pnand %p3431_p0, %p3425_p11 }
  0x7c   :  { %3435 = shalt.err (!%p3432_p1)
}
  0x7d   :  { %211 = dma.hbm_to_vmem [thread:$0]  %s4019_s30, 48, %s209_s16, [#allocation24]  }
  0x7e   :  { %s3922_s8 = smov [#allocation26]   ;;  %s3923_s26 = smov [#allocation29]  }
  0x7f   :  { %s230_s23 = sshll.u32 %s3922_s8, 4  ;;  %s252_s28 = sshll.u32 %s3923_s26, 4  ;;  %s231_s23 = int_to_ptr.vmem [resolvable:$true] %s230_s23  ;;  %s253_s28 = int_to_ptr.vmem [resolvable:$true] %s252_s28 }
  0x80   :  { %s3444_s1 = scalar_lea.vmem %s231_s23, 32  ;;  %p3449_p3 = scmp.lt.s32.totalorder %s231_s23, %s231_s23 }
  0x81   :  { %p3445_p2 = scmp.ne.s32.totalorder %s231_s23, %s3444_s1  ;;  %p3450_p4 = scmp.lt.s32.totalorder %s3444_s1, %s3444_s1 }
  0x83   :  { %p3451_p5 = por %p3450_p4, %p3449_p3 }
  0x85   :  { %p3452_p6 = pnand %p3451_p5, %p3445_p2 }
  0x87   :  { %3455 = shalt.err (!%p3452_p6)
}
  0x88   :  { %233 = dma.hbm_to_vmem [thread:$0]  %s4029_s12, 32, %s231_s23, [#allocation27]  }
  0x89   :  { %s3464_s19 = scalar_lea.vmem %s253_s28, 384  ;;  %p3469_p8 = scmp.lt.s32.totalorder %s253_s28, %s253_s28 }
  0x8a   :  { %p3465_p7 = scmp.ne.s32.totalorder %s253_s28, %s3464_s19  ;;  %p3470_p9 = scmp.lt.s32.totalorder %s3464_s19, %s3464_s19 }
  0x8c   :  { %p3471_p10 = por %p3470_p9, %p3469_p8 }
  0x8e   :  { %p3472_p11 = pnand %p3471_p10, %p3465_p7 }
  0x90   :  { %3475 = shalt.err (!%p3472_p11)
}
  0x91   :  { %255 = dma.hbm_to_vmem [thread:$0]  %s4044_s4, 384, %s253_s28, [#allocation30]  }
  0x92   :  { %s3924_s30 = smov [#allocation32]   ;;  %s3925_s7 = smov [#allocation35]  }
  0x93   :  { %s273_s2 = sshll.u32 %s3924_s30, 4  ;;  %s296_s10 = sshll.u32 %s3925_s7, 4  ;;  %s274_s2 = int_to_ptr.vmem [resolvable:$true] %s273_s2  ;;  %s297_s10 = int_to_ptr.vmem [resolvable:$true] %s296_s10 }
  0x94   :  { %s3484_s13 = scalar_lea.vmem %s274_s2, 6144  ;;  %p3489_p13 = scmp.lt.s32.totalorder %s274_s2, %s274_s2 }
  0x95   :  { %p3485_p12 = scmp.ne.s32.totalorder %s274_s2, %s3484_s13  ;;  %p3490_p0 = scmp.lt.s32.totalorder %s3484_s13, %s3484_s13 }
  0x97   :  { %p3491_p1 = por %p3490_p0, %p3489_p13 }
  0x99   :  { %p3492_p2 = pnand %p3491_p1, %p3485_p12 }
  0x9b   :  { %3495 = shalt.err (!%p3492_p2)
}
  0x9c   :  { %s3926_s12 = smov 64   ;;  %s3927_s11 = smov 4  }
  0x9d   :  { %279 = dma.hbm_to_vmem [thread:$0]  %s4054_s20, 6144, %s274_s2, [#allocation33], %s3926_s12, %s3926_s12, %s3927_s11  }
  0x9e   :  { %s3504_s4 = scalar_lea.vmem %s297_s10, 768  ;;  %p3509_p4 = scmp.lt.s32.totalorder %s297_s10, %s297_s10 }
  0x9f   :  { %p3505_p3 = scmp.ne.s32.totalorder %s297_s10, %s3504_s4  ;;  %p3510_p5 = scmp.lt.s32.totalorder %s3504_s4, %s3504_s4 }
  0xa1   :  { %p3511_p6 = por %p3510_p5, %p3509_p4 }
  0xa3   :  { %p3512_p7 = pnand %p3511_p6, %p3505_p3 }
  0xa5   :  { %3515 = shalt.err (!%p3512_p7)
}
  0xa6   :  { %299 = dma.hbm_to_vmem [thread:$0]  %s4064_s24, 768, %s297_s10, [#allocation36]  }
  0xa7   :  { %s3928_s21 = smov [#allocation2]   ;;  %s3929_s15 = smov [#allocation7]  }
  0xa8   :  { %91 = dma.hbm_to_smem %s3959_s5, 16, %s3928_s21, [#allocation5]  }
  0xa9   :  { %s98_s0 = sshll.u32 %s3929_s15, 4  ;;  %s3930_s16 = smov [#allocation10]   ;;  %s99_s0 = int_to_ptr.vmem [resolvable:$true] %s98_s0 }
  0xaa   :  { %s118_s18 = sshll.u32 %s3930_s16, 4  ;;  %s3532_s29 = scalar_lea.vmem %s99_s0, 128  ;;  %s119_s18 = int_to_ptr.vmem [resolvable:$true] %s118_s18 }
  0xab   :  { %p3533_p8 = scmp.ne.s32.totalorder %s99_s0, %s3532_s29  ;;  %p3537_p9 = scmp.lt.s32.totalorder %s99_s0, %s99_s0 }
  0xac   :  { %p3538_p10 = scmp.lt.s32.totalorder %s3532_s29, %s3532_s29 }
  0xae   :  { %p3539_p11 = por %p3538_p10, %p3537_p9 }
  0xb0   :  { %p3540_p12 = pnand %p3539_p11, %p3533_p8 }
  0xb2   :  { %3543 = shalt.err (!%p3540_p12)
}
  0xb3   :  { %101 = dma.hbm_to_vmem [thread:$0]  %s3964_s9, 128, %s99_s0, [#allocation3]  }
  0xb4   :  { %s3552_s20 = scalar_lea.vmem %s119_s18, 128  ;;  %p3557_p0 = scmp.lt.s32.totalorder %s119_s18, %s119_s18 }
  0xb5   :  { %p3553_p13 = scmp.ne.s32.totalorder %s119_s18, %s3552_s20  ;;  %p3558_p1 = scmp.lt.s32.totalorder %s3552_s20, %s3552_s20 }
  0xb7   :  { %p3559_p2 = por %p3558_p1, %p3557_p0 }
  0xb9   :  { %p3560_p3 = pnand %p3559_p2, %p3553_p13 }
  0xbb   :  { %3563 = shalt.err (!%p3560_p3)
}
  0xbc   :  { %121 = dma.hbm_to_vmem [thread:$0]  %s3974_s17, 128, %s119_s18, [#allocation9]  }
  0xbd   :  { %s3931_s5 = smov [#allocation13]   ;;  %s3932_s22 = smov [#allocation16]  }
  0xbe   :  { %s138_s24 = sshll.u32 %s3931_s5, 4  ;;  %s158_s8 = sshll.u32 %s3932_s22, 4  ;;  %s139_s24 = int_to_ptr.vmem [resolvable:$true] %s138_s24  ;;  %s159_s8 = int_to_ptr.vmem [resolvable:$true] %s158_s8 }
  0xbf   :  { %s3572_s23 = scalar_lea.vmem %s139_s24, 128  ;;  %p3577_p5 = scmp.lt.s32.totalorder %s139_s24, %s139_s24 }
  0xc0   :  { %p3573_p4 = scmp.ne.s32.totalorder %s139_s24, %s3572_s23  ;;  %p3578_p6 = scmp.lt.s32.totalorder %s3572_s23, %s3572_s23 }
  0xc2   :  { %p3579_p7 = por %p3578_p6, %p3577_p5 }
  0xc4   :  { %p3580_p8 = pnand %p3579_p7, %p3573_p4 }
  0xc6   :  { %3583 = shalt.err (!%p3580_p8)
}
  0xc7   :  { %141 = dma.hbm_to_vmem [thread:$0]  %s3984_s25, 128, %s139_s24, [#allocation12]  }
  0xc8   :  { %s3592_s9 = scalar_lea.vmem %s159_s8, 16  ;;  %s3596_s26 = scalar_lea.vmem %s159_s8, 32 }
  0xc9   :  { %p3593_p9 = scmp.ne.s32.totalorder %s159_s8, %s3592_s9  ;;  %p3597_p10 = scmp.lt.s32.totalorder %s159_s8, %s159_s8 }
  0xca   :  { %p3598_p11 = scmp.lt.s32.totalorder %s3596_s26, %s3592_s9 }
  0xcc   :  { %p3599_p12 = por %p3598_p11, %p3597_p10 }
  0xce   :  { %p3600_p13 = pnand %p3599_p12, %p3593_p9 }
  0xd0   :  { %3603 = shalt.err (!%p3600_p13)
}
  0xd1   :  { %s4275_s17 = sld [smem:[#allocation64_spill]]  ;;  %s3933_s28 = smov [#allocation19]  }
  0xd2   :  { %s178_s1 = sshll.u32 %s3933_s28, 4  ;;  %s3934_s19 = smov [#allocation22]   ;;  %s179_s1 = int_to_ptr.vmem [resolvable:$true] %s178_s1 }
  0xd3   :  { %s198_s30 = sshll.u32 %s3934_s19, 4  ;;  %s3612_s2 = scalar_lea.vmem %s179_s1, 384  ;;  %s199_s30 = int_to_ptr.vmem [resolvable:$true] %s198_s30 }
  0xd4   :  { %p3613_p0 = scmp.ne.s32.totalorder %s179_s1, %s3612_s2  ;;  %p3617_p1 = scmp.lt.s32.totalorder %s179_s1, %s179_s1 }
  0xd5   :  { %p3618_p2 = scmp.lt.s32.totalorder %s3612_s2, %s3612_s2 }
  0xd7   :  { %161 = dma.hbm_to_vmem [thread:$0]  %s4275_s17, 16, %s159_s8, [#allocation15]  }
  0xd8   :  { %p3619_p3 = por %p3618_p2, %p3617_p1 }
  0xda   :  { %p3620_p4 = pnand %p3619_p3, %p3613_p0 }
  0xdc   :  { %3623 = shalt.err (!%p3620_p4)
}
  0xdd   :  { %s4276_s25 = sld [smem:[#allocation65_spill]]  ;;  %s3632_s7 = scalar_lea.vmem %s199_s30, 384 }
  0xde   :  { %p3633_p5 = scmp.ne.s32.totalorder %s199_s30, %s3632_s7  ;;  %p3637_p6 = scmp.lt.s32.totalorder %s199_s30, %s199_s30 }
  0xdf   :  { %p3638_p7 = scmp.lt.s32.totalorder %s3632_s7, %s3632_s7 }
  0xe1   :  { %p3639_p8 = por %p3638_p7, %p3637_p6 }
  0xe3   :  { %181 = dma.hbm_to_vmem [thread:$0]  %s4276_s25, 384, %s179_s1, [#allocation18]  }
  0xe4   :  { %p3640_p9 = pnand %p3639_p8, %p3633_p5 }
  0xe6   :  { %3643 = shalt.err (!%p3640_p9)
}
  0xe7   :  { %s4277_s10 = sld [smem:[#allocation66_spill]]  ;;  %s3935_s13 = smov [#allocation25]  }
  0xe8   :  { %s217_s4 = sshll.u32 %s3935_s13, 4  ;;  %s218_s4 = int_to_ptr.vmem [resolvable:$true] %s217_s4 }
  0xe9   :  { %s3652_s21 = scalar_lea.vmem %s218_s4, 4096  ;;  %p3657_p11 = scmp.lt.s32.totalorder %s218_s4, %s218_s4 }
  0xea   :  { %p3653_p10 = scmp.ne.s32.totalorder %s218_s4, %s3652_s21  ;;  %p3658_p12 = scmp.lt.s32.totalorder %s3652_s21, %s3652_s21 }
  0xec   :  { %p3659_p13 = por %p3658_p12, %p3657_p11 }
  0xed   :  { %201 = dma.hbm_to_vmem [thread:$0]  %s4277_s10, 384, %s199_s30, [#allocation21]  }
  0xee   :  { %p3660_p0 = pnand %p3659_p13, %p3653_p10 }
  0xf0   :  { %3663 = shalt.err (!%p3660_p0)
}
  0xf1   :  { %s3936_s15 = smov 256   ;;  %s4278_s0 = sld [smem:[#allocation67_spill]] }
  0xf2   :  { %s3937_s16 = smov 16   ;;  %s3938_s18 = smov [#allocation28]  }
  0xf3   :  { %s240_s29 = sshll.u32 %s3938_s18, 4  ;;  %s3939_s20 = smov [#allocation31]   ;;  %s241_s29 = int_to_ptr.vmem [resolvable:$true] %s240_s29 }
  0xf4   :  { %s261_s5 = sshll.u32 %s3939_s20, 4  ;;  %s3672_s24 = scalar_lea.vmem %s241_s29, 16  ;;  %s262_s5 = int_to_ptr.vmem [resolvable:$true] %s261_s5 }
  0xf5   :  { %p3673_p1 = scmp.ne.s32.totalorder %s241_s29, %s3672_s24  ;;  %s3676_s22 = scalar_lea.vmem %s241_s29, 32 }
  0xf6   :  { %p3677_p2 = scmp.lt.s32.totalorder %s241_s29, %s241_s29  ;;  %p3678_p3 = scmp.lt.s32.totalorder %s3676_s22, %s3672_s24 }
  0xf7   :  { %223 = dma.hbm_to_vmem [thread:$0]  %s4278_s0, 4096, %s218_s4, [#allocation24], %s3936_s15, %s3936_s15, %s3937_s16  }
  0xf8   :  { %p3679_p4 = por %p3678_p3, %p3677_p2 }
  0xfa   :  { %p3680_p5 = pnand %p3679_p4, %p3673_p1 }
  0xfc   :  { %3683 = shalt.err (!%p3680_p5)
}
  0xfd   :  { %s4279_s8 = sld [smem:[#allocation68_spill]]  ;;  %s3692_s23 = scalar_lea.vmem %s262_s5, 6144 }
  0xfe   :  { %p3693_p6 = scmp.ne.s32.totalorder %s262_s5, %s3692_s23  ;;  %p3697_p7 = scmp.lt.s32.totalorder %s262_s5, %s262_s5 }
  0xff   :  { %p3698_p8 = scmp.lt.s32.totalorder %s3692_s23, %s3692_s23 }
 0x101   :  { %p3699_p9 = por %p3698_p8, %p3697_p7 }
 0x103   :  { %243 = dma.hbm_to_vmem [thread:$0]  %s4279_s8, 16, %s241_s29, [#allocation27]  }
 0x104   :  { %p3700_p10 = pnand %p3699_p9, %p3693_p6 }
 0x106   :  { %3703 = shalt.err (!%p3700_p10)
}
 0x107   :  { %s4280_s9 = sld [smem:[#allocation70_spill]]  ;;  %s3940_s26 = smov [#allocation34]  }
 0x108   :  { %s286_s17 = sshll.u32 %s3940_s26, 4  ;;  %s3941_s28 = smov [#allocation37]   ;;  %s287_s17 = int_to_ptr.vmem [resolvable:$true] %s286_s17 }
 0x109   :  { %s306_s1 = sshll.u32 %s3941_s28, 4  ;;  %s3712_s19 = scalar_lea.vmem %s287_s17, 768  ;;  %s307_s1 = int_to_ptr.vmem [resolvable:$true] %s306_s1 }
 0x10a   :  { %p3713_p11 = scmp.ne.s32.totalorder %s287_s17, %s3712_s19  ;;  %p3717_p12 = scmp.lt.s32.totalorder %s287_s17, %s287_s17 }
 0x10b   :  { %p3718_p13 = scmp.lt.s32.totalorder %s3712_s19, %s3712_s19 }
 0x10d   :  { %267 = dma.hbm_to_vmem [thread:$0]  %s4280_s9, 6144, %s262_s5, [#allocation30], %s3926_s12, %s3926_s12, %s3927_s11  }
 0x10e   :  { %p3719_p0 = por %p3718_p13, %p3717_p12 }
 0x110   :  { %p3720_p1 = pnand %p3719_p0, %p3713_p11 }
 0x112   :  { %3723 = shalt.err (!%p3720_p1)
}
 0x113   :  { %s4281_s30 = sld [smem:[#allocation71_spill]]  ;;  %s3732_s2 = scalar_lea.vmem %s307_s1, 384 }
 0x114   :  { %p3733_p2 = scmp.ne.s32.totalorder %s307_s1, %s3732_s2  ;;  %p3737_p3 = scmp.lt.s32.totalorder %s307_s1, %s307_s1 }
 0x115   :  { %p3738_p4 = scmp.lt.s32.totalorder %s3732_s2, %s3732_s2 }
 0x117   :  { %p3739_p5 = por %p3738_p4, %p3737_p3 }
 0x119   :  { %289 = dma.hbm_to_vmem [thread:$0]  %s4281_s30, 768, %s287_s17, [#allocation33]  }
 0x11a   :  { %p3740_p6 = pnand %p3739_p5, %p3733_p2 }
 0x11c   :  { %3743 = shalt.err (!%p3740_p6)
}
 0x11d   :  { %s4282_s12 = sld [smem:[#allocation72_spill]]  ;;  %s3942_s11 = smov [#allocation38]  }
 0x11e   :  { %s316_s25 = sshll.u32 %s3942_s11, 4  ;;  %s317_s25 = int_to_ptr.vmem [resolvable:$true] %s316_s25 }
 0x11f   :  { %s3752_s7 = scalar_lea.vmem %s317_s25, 384  ;;  %p3757_p8 = scmp.lt.s32.totalorder %s317_s25, %s317_s25 }
 0x120   :  { %p3753_p7 = scmp.ne.s32.totalorder %s317_s25, %s3752_s7  ;;  %p3758_p9 = scmp.lt.s32.totalorder %s3752_s7, %s3752_s7 }
 0x122   :  { %p3759_p10 = por %p3758_p9, %p3757_p8 }
 0x123   :  { %309 = dma.hbm_to_vmem [thread:$0]  %s4282_s12, 384, %s307_s1, [#allocation36]  }
 0x124   :  { %p3760_p11 = pnand %p3759_p10, %p3753_p7 }
 0x126   :  { %3763 = shalt.err (!%p3760_p11)
}
 0x127   :  { %s4283_s10 = sld [smem:[#allocation73_spill]] }
 0x12d   :  { %319 = dma.hbm_to_vmem [thread:$0]  %s4283_s10, 384, %s317_s25, [#allocation39]  }
 0x12e   :  { %3852 = dma.done.wait [#allocation5], 16  }
 0x12f   :  { %3853 = vsyncadd [#allocation5], 4294967280 }
 0x130   :  { %3854 = dma.done.wait [#allocation3], 128  }
 0x131   :  { %3855 = vsyncadd [#allocation3], 4294967168 }
 0x132   :  { %3856 = dma.done.wait [#allocation9], 256  }
 0x133   :  { %3857 = vsyncadd [#allocation9], 4294967040 }
 0x134   :  { %3858 = dma.done.wait [#allocation12], 256  }
 0x135   :  { %3859 = vsyncadd [#allocation12], 4294967040 }
 0x136   :  { %3860 = dma.done.wait [#allocation15], 32  }
 0x137   :  { %3861 = vsyncadd [#allocation15], 4294967264 }
 0x138   :  { %3862 = dma.done.wait [#allocation18], 400  }
 0x139   :  { %3863 = vsyncadd [#allocation18], 4294966896 }
 0x13a   :  { %3864 = dma.done.wait [#allocation21], 768  }
 0x13b   :  { %3865 = vsyncadd [#allocation21], 4294966528 }
 0x13c   :  { %3866 = dma.done.wait [#allocation24], 4144  }
 0x13d   :  { %3867 = vsyncadd [#allocation24], 4294963152 }
 0x13e   :  { %3868 = dma.done.wait [#allocation27], 48  }
 0x13f   :  { %3869 = vsyncadd [#allocation27], 4294967248 }
 0x140   :  { %3870 = dma.done.wait [#allocation30], 6528  }
 0x141   :  { %3871 = vsyncadd [#allocation30], 4294960768 }
 0x142   :  { %3872 = dma.done.wait [#allocation33], 6912  }
 0x143   :  { %3873 = vsyncadd [#allocation33], 4294960384 }
 0x144   :  { %3874 = dma.done.wait [#allocation36], 1152  }
 0x145   :  { %3875 = vsyncadd [#allocation36], 4294966144 }
 0x146   :  { %3876 = dma.done.wait [#allocation39], 384  }
 0x147   :  { %3877 = vsyncadd [#allocation39], 4294966912 }
 0x148   :  { %393 = sfence }
 0x149   :  { %v407_v0 = vld [vmem:[#allocation20 + $0x8] sm:$0xff]  ;;  %v406_v1 = vld [vmem:[#allocation20] sm:$0xff]  ;;  %v408_v2 = vld [vmem:[#allocation20 + $0x10] sm:$0xff]  ;;  %v3943_v3 = vmov 0.0   ;;  %s2797_s13 = sld [smem:[#allocation2 + $0x1]]  ;;  %vm3944_vm0 = vmmov 0  }
 0x14a   :  { %443 = vmatprep.subr.mxu0 %v407_v0  ;;  %3092 = vmatprep.subr.mxu1 %v3943_v3  ;;  %v404_v4 = vld [vmem:[#allocation19 + $0x8] sm:$0xff]  ;;  %v397_v5 = vld [vmem:[#allocation7] sm:$0xff]  ;;  %v399_v6 = vld [vmem:[#allocation8] sm:$0xff]  ;;  %vm409_vm1 = vcmask 64512   ;;  %s4284_s4 = sld [smem:[#allocation69_spill]]  ;;  %vm2173_vm2 = vcmask 1043456  }
 0x14b   :  { %444 = vmatpush1.msra.mxu0 %v406_v1  ;;  %477 = vmatprep.mubr.f32.mxu0 %v3943_v3  ;;  %v400_v7 = vsub.f32 %v397_v5, %v399_v6  ;;  %v403_v9 = vld [vmem:[#allocation19] sm:$0xff]  ;;  %v405_v11 = vld [vmem:[#allocation19 + $0x10] sm:$0xff]  ;;  %v699_v12 = vld [vmem:[#allocation22 + $0x8] sm:$0xff]  ;;  %s395_s21 = sld [smem:[#allocation2]]  ;;  %s3946_s16 = smov [#allocation41]  }
 0x14c   :  { %3093 = vmatpush3.msra.mxu1 %v408_v2  ;;  %3094 = vmatprep.mubr.msk.f32.mxu1 %vm3944_vm0, %v3943_v3  ;;  %v698_v13 = vld [vmem:[#allocation22] sm:$0xff]  ;;  %v700_v14 = vld [vmem:[#allocation22 + $0x10] sm:$0xff]  ;;  %v3184_v20 = vld [vmem:[#allocation32 + $0x70] sm:$0xff]   ;;  %s4285_s15 = sld [smem:[#allocation74_spill]]  ;;  %s2702_s18 = sshll.u32 %s3946_s16, 4  ;;  %s2703_s18 = int_to_ptr.vmem [resolvable:$true] %s2702_s18 }
 0x14d   :  { %587 = vmatprep.subr.mxu0 %v404_v4  ;;  %3097 = vmatprep.subr.mxu1 %v3943_v3  ;;  %v3180_v15 = vld [vmem:[#allocation32 + $0x78] sm:$0xff]   ;;  %v3185_v21 = vld [vmem:[#allocation32 + $0xf0] sm:$0xff]   ;;  %v3188_v24 = vld [vmem:[#allocation32 + $0x68] sm:$0xff]   ;;  %s4286_s0 = sld [smem:[#allocation75_spill]]  ;;  %s3947_s29 = smov [#allocation40]  }
 0x14e   :  { %v3181_v16 = vld [vmem:[#allocation32 + $0xf8] sm:$0xff]   ;;  %v3186_v22 = vld [vmem:[#allocation32 + $0x30] sm:$0xff]   ;;  %v3189_v25 = vld [vmem:[#allocation32 + $0xe8] sm:$0xff]   ;;  %s2692_s20 = sshll.u32 %s3947_s29, 4  ;;  %s3764_s5 = scalar_lea.vmem %s2703_s18, 128  ;;  %s2693_s20 = int_to_ptr.vmem [resolvable:$true] %s2692_s20 }
 0x14f   :  { %v401_v8 = vstv %s2797_s13  ;;  %v398_v17 = vld [vmem:[#allocation10] sm:$0xff]  ;;  %v3187_v23 = vld [vmem:[#allocation32 + $0xb0] sm:$0xff]   ;;  %v3190_v26 = vld [vmem:[#allocation32 + $0x28] sm:$0xff]   ;;  %p3765_p12 = scmp.ne.s32.totalorder %s2703_s18, %s3764_s5  ;;  %p3769_p13 = scmp.lt.s32.totalorder %s2703_s18, %s2703_s18 }
 0x150   :  { %v4145_v10 = vmul.f32 %v401_v8, %v400_v7  ;;  %v3182_v18 = vld [vmem:[#allocation32 + $0x38] sm:$0xff]   ;;  %v3191_v27 = vld [vmem:[#allocation32 + $0xa8] sm:$0xff]   ;;  %v3192_v28 = vld [vmem:[#allocation32 + $0x60] sm:$0xff]   ;;  %p3770_p0 = scmp.lt.s32.totalorder %s3764_s5, %s3764_s5 }
 0x151   :  { %v3183_v19 = vld [vmem:[#allocation32 + $0xb8] sm:$0xff]   ;;  %v3193_v29 = vld [vmem:[#allocation32 + $0xe0] sm:$0xff]   ;;  %v3200_v36 = vld [vmem:[#allocation32 + $0x50] sm:$0xff]  }
 0x152   :  { %2798 = vmatmul.mubr.msk.f32.vlgmr.msra.gmra.mxu0 %vm409_vm1, %v4145_v10  ;;  %3095 = vmatmul.mubr.msk.f32.vlgmr.msra.gmra.mxu1 %vm409_vm1, %v4145_v10  ;;  %v3194_v30 = vld [vmem:[#allocation32 + $0x20] sm:$0xff]   ;;  %v3196_v32 = vld [vmem:[#allocation32 + $0x58] sm:$0xff]   ;;  %v3201_v37 = vld [vmem:[#allocation32 + $0xd0] sm:$0xff]   ;;  %p3771_p1 = por %p3770_p0, %p3769_p13 }
 0x153   :  { %588 = vmatpush1.msra.mxu0 %v403_v9  ;;  %3098 = vmatpush3.msra.mxu1 %v405_v11  ;;  %v3195_v31 = vld [vmem:[#allocation32 + $0xa0] sm:$0xff]   ;;  %v3197_v33 = vld [vmem:[#allocation32 + $0xd8] sm:$0xff]   ;;  %v3202_v38 = vld [vmem:[#allocation32 + $0x10] sm:$0xff]  }
 0x154   :  { %621 = vmatprep.mubr.f32.mxu0 %v3943_v3  ;;  %3099 = vmatprep.mubr.msk.f32.mxu1 %vm3944_vm0, %v3943_v3  ;;  %v3198_v34 = vld [vmem:[#allocation32 + $0x18] sm:$0xff]   ;;  %v3203_v39 = vld [vmem:[#allocation32 + $0x90] sm:$0xff]   ;;  %v3204_v40 = vld [vmem:[#allocation32 + $0x48] sm:$0xff]   ;;  %p3772_p2 = pnand %p3771_p1, %p3765_p12 }
 0x155   :  { %734 = vmatprep.subr.mxu0 %v699_v12  ;;  %3102 = vmatprep.subr.mxu1 %v3943_v3  ;;  %v3199_v35 = vld [vmem:[#allocation32 + $0x98] sm:$0xff]   ;;  %v3205_v41 = vld [vmem:[#allocation32 + $0xc8] sm:$0xff]   ;;  %v1020_v43 = vld [vmem:[#allocation29 + $0x8] sm:$0xff] }
 0x156   :  { %2800 = vmatmul.mubr.msk.f32.vlgmr.msra.gmra.mxu0 %vm409_vm1, %v397_v5  ;;  %3100 = vmatmul.mubr.msk.f32.vlgmr.msra.gmra.mxu1 %vm409_vm1, %v397_v5  ;;  %v1019_v42 = vld [vmem:[#allocation29] sm:$0xff]  ;;  %v2808_v46 = vcombine.high %v1020_v43, %v1020_v43  ;;  %v3208_v48 = vld [vmem:[#allocation32 + $0x40] sm:$0xff]   ;;  %v3216_v52 = vld [vmem:[#allocation32 + $0x178] sm:$0xff]   ;;  %v2807_v56 = vcombine.low %v1020_v43, %v1020_v43 }
 0x157   :  { %735 = vmatpush1.msra.mxu0 %v698_v13  ;;  %3103 = vmatpush3.msra.mxu1 %v700_v14  ;;  %v3206_v44 = vld [vmem:[#allocation32 + $0x8] sm:$0xff]   ;;  %v2806_v45 = vcombine.high %v1019_v42, %v1019_v42  ;;  %v3209_v49 = vld [vmem:[#allocation32 + $0xc0] sm:$0xff]   ;;  %v3217_v53 = vld [vmem:[#allocation31 + $0x78] sm:$0xff]   ;;  %v2805_v55 = vcombine.low %v1019_v42, %v1019_v42 }
 0x158   :  { %768 = vmatprep.mubr.f32.mxu0 %v3943_v3  ;;  %3104 = vmatprep.mubr.msk.f32.mxu1 %vm3944_vm0, %v3943_v3  ;;  %v3207_v47 = vld [vmem:[#allocation32 + $0x88] sm:$0xff]   ;;  %v3210_v50 = vld [vmem:[#allocation32] sm:$0xff]   ;;  %v3218_v54 = vld [vmem:[#allocation32 + $0x138] sm:$0xff]  }
 0x159   :  { %2960 = vmatprep.subr.bf16.mxu0 %v3180_v15  ;;  %2982 = vmatprep.subr.bf16.mxu1 %v3181_v16  ;;  %v3211_v51 = vld [vmem:[#allocation32 + $0x80] sm:$0xff]   ;;  %v3219_v57 = vld [vmem:[#allocation31 + $0x38] sm:$0xff]   ;;  %v3220_v58 = vld [vmem:[#allocation32 + $0x170] sm:$0xff]  }
 0x15a   :  { %2802 = vmatmul.mubr.msk.f32.vlgmr.msra.gmra.mxu0 %vm409_vm1, %v398_v17  ;;  %3105 = vmatmul.mubr.msk.f32.vlgmr.msra.gmra.mxu1 %vm409_vm1, %v398_v17  ;;  %v3221_v59 = vld [vmem:[#allocation31 + $0x70] sm:$0xff]   ;;  %v3224_v62 = vld [vmem:[#allocation32 + $0x168] sm:$0xff]   ;;  %v3228_v2 = vld [vmem:[#allocation32 + $0x160] sm:$0xff]  }
 0x15b   :  { %2961 = vmatpush3.bf16.msra.mxu0 %v3182_v18  ;;  %2983 = vmatpush3.bf16.msra.mxu1 %v3183_v19  ;;  %v3222_v60 = vld [vmem:[#allocation32 + $0x130] sm:$0xff]   ;;  %v3225_v63 = vld [vmem:[#allocation31 + $0x68] sm:$0xff]   ;;  %v3229_v4 = vld [vmem:[#allocation31 + $0x60] sm:$0xff]  }
 0x15c   :  { %2962 = vmatprep.subr.bf16.mxu0 %v3184_v20  ;;  %2984 = vmatprep.subr.bf16.mxu1 %v3185_v21  ;;  %v3223_v61 = vld [vmem:[#allocation31 + $0x30] sm:$0xff]   ;;  %v3226_v0 = vld [vmem:[#allocation32 + $0x128] sm:$0xff]   ;;  %v3230_v5 = vld [vmem:[#allocation32 + $0x120] sm:$0xff]  }
 0x15d   :  { %1459 = vmatprep.mubr.bf16.mxu0 %v2806_v45  ;;  %1499 = vmatprep.mubr.bf16.mxu1 %v2808_v46  ;;  %v3227_v1 = vld [vmem:[#allocation31 + $0x28] sm:$0xff]   ;;  %v3231_v6 = vld [vmem:[#allocation31 + $0x20] sm:$0xff]   ;;  %v3232_v7 = vld [vmem:[#allocation32 + $0x158] sm:$0xff]  }
 0x15e   :  { %v3233_v8 = vld [vmem:[#allocation31 + $0x58] sm:$0xff]   ;;  %v3236_v12 = vld [vmem:[#allocation32 + $0x150] sm:$0xff]   ;;  %v3240_v16 = vld [vmem:[#allocation32 + $0x148] sm:$0xff]  }
 0x15f   :  { %2963 = vmatpush3.bf16.msra.mxu0 %v3186_v22  ;;  %2985 = vmatpush3.bf16.msra.mxu1 %v3187_v23  ;;  %v3234_v9 = vld [vmem:[#allocation32 + $0x118] sm:$0xff]   ;;  %v3237_v13 = vld [vmem:[#allocation31 + $0x50] sm:$0xff]   ;;  %v3241_v17 = vld [vmem:[#allocation31 + $0x48] sm:$0xff]  }
 0x160   :  { %2964 = vmatprep.subr.bf16.mxu0 %v3188_v24  ;;  %2986 = vmatprep.subr.bf16.mxu1 %v3189_v25  ;;  %v3235_v11 = vld [vmem:[#allocation31 + $0x18] sm:$0xff]   ;;  %v3238_v14 = vld [vmem:[#allocation32 + $0x110] sm:$0xff]   ;;  %v3242_v19 = vld [vmem:[#allocation32 + $0x108] sm:$0xff]  }
 0x161   :  { %v3239_v15 = vld [vmem:[#allocation31 + $0x10] sm:$0xff]   ;;  %v1021_v18 = vld [vmem:[#allocation29 + $0x10] sm:$0xff]  ;;  %v920_v21 = vld [vmem:[%s4284_s4] sm:$0xff] }
 0x162   :  { %v2810_v20 = vcombine.high %v1021_v18, %v1021_v18  ;;  %v3243_v22 = vld [vmem:[#allocation31 + $0x8] sm:$0xff]   ;;  %v2860_v23 = vcombine.high %v920_v21, %v920_v21  ;;  %v3244_v24 = vld [vmem:[#allocation32 + $0x140] sm:$0xff]   ;;  %v3268_v46 = vld [vmem:[#allocation31 + $0xd8] sm:$0xff]  }
 0x163   :  { %2965 = vmatpush3.bf16.msra.mxu0 %v3190_v26  ;;  %2987 = vmatpush3.bf16.msra.mxu1 %v3191_v27  ;;  %v3245_v25 = vld [vmem:[#allocation31 + $0x40] sm:$0xff]  }
 0x164   :  { %2966 = vmatprep.subr.bf16.mxu0 %v3192_v28  ;;  %2988 = vmatprep.subr.bf16.mxu1 %v3193_v29  ;;  %v3246_v26 = vld [vmem:[#allocation32 + $0x100] sm:$0xff]   ;;  %v3252_v28 = vld [vmem:[#allocation31 + $0xf8] sm:$0xff]  }
 0x165   :  { %v3247_v27 = vld [vmem:[#allocation31] sm:$0xff]   ;;  %v3253_v29 = vld [vmem:[#allocation31 + $0x178] sm:$0xff]  }
 0x166   :  { %v3264_v42 = vld [vmem:[#allocation31 + $0xe0] sm:$0xff]  }
 0x167   :  { %2967 = vmatpush3.bf16.msra.mxu0 %v3194_v30  ;;  %2989 = vmatpush3.bf16.msra.mxu1 %v3195_v31  ;;  %v3254_v30 = vld [vmem:[#allocation31 + $0xb8] sm:$0xff]   ;;  %v2809_v31 = vcombine.low %v1021_v18, %v1021_v18  ;;  %v3265_v43 = vld [vmem:[#allocation31 + $0x160] sm:$0xff]   ;;  %v2010_v18 = vld [vmem:[#allocation25 + $0xc8] sm:$0xff] }
 0x168   :  { %2968 = vmatprep.subr.bf16.mxu0 %v3196_v32  ;;  %2990 = vmatprep.subr.bf16.mxu1 %v3197_v33  ;;  %v2859_v32 = vcombine.low %v920_v21, %v920_v21  ;;  %v3255_v33 = vld [vmem:[#allocation31 + $0x138] sm:$0xff]   ;;  %v3267_v45 = vld [vmem:[#allocation31 + $0x120] sm:$0xff]  }
 0x169   :  { %v2007_v21 = vld [vmem:[#allocation25 + $0xb0] sm:$0xff] }
 0x16b   :  { %2969 = vmatpush3.bf16.msra.mxu0 %v3198_v34  ;;  %2991 = vmatpush3.bf16.msra.mxu1 %v3199_v35  ;;  %v3256_v34 = vld [vmem:[#allocation31 + $0xf0] sm:$0xff]  }
 0x16c   :  { %2970 = vmatprep.subr.bf16.mxu0 %v3200_v36  ;;  %2992 = vmatprep.subr.bf16.mxu1 %v3201_v37  ;;  %v3257_v35 = vld [vmem:[#allocation31 + $0x170] sm:$0xff]  }
 0x16d   :  { %v3258_v36 = vld [vmem:[#allocation31 + $0xb0] sm:$0xff]  }
 0x16e   :  { %v3259_v37 = vld [vmem:[#allocation31 + $0x130] sm:$0xff]  }
 0x16f   :  { %2971 = vmatpush3.bf16.msra.mxu0 %v3202_v38  ;;  %2993 = vmatpush3.bf16.msra.mxu1 %v3203_v39  ;;  %v3260_v38 = vld [vmem:[#allocation31 + $0xe8] sm:$0xff]  }
 0x170   :  { %2972 = vmatprep.subr.bf16.mxu0 %v3204_v40  ;;  %2994 = vmatprep.subr.bf16.mxu1 %v3205_v41  ;;  %v3261_v39 = vld [vmem:[#allocation31 + $0x168] sm:$0xff]  }
 0x171   :  { %v3262_v40 = vld [vmem:[#allocation31 + $0xa8] sm:$0xff]  }
 0x172   :  { %v3263_v41 = vld [vmem:[#allocation31 + $0x128] sm:$0xff]  }
 0x173   :  { %2973 = vmatpush3.bf16.msra.mxu0 %v3206_v44  ;;  %2995 = vmatpush3.bf16.msra.mxu1 %v3207_v47  ;;  %v3266_v44 = vld [vmem:[#allocation31 + $0xa0] sm:$0xff]   ;;  %v3269_v47 = vld [vmem:[#allocation31 + $0x158] sm:$0xff]  }
 0x174   :  { %2974 = vmatprep.subr.bf16.mxu0 %v3208_v48  ;;  %2996 = vmatprep.subr.bf16.mxu1 %v3209_v49  ;;  %v3270_v48 = vld [vmem:[#allocation31 + $0x98] sm:$0xff]  }
 0x175   :  { %v3271_v49 = vld [vmem:[#allocation31 + $0x118] sm:$0xff]  }
 0x177   :  { %2975 = vmatpush3.bf16.msra.mxu0 %v3210_v50  ;;  %2997 = vmatpush3.bf16.msra.mxu1 %v3211_v51  ;;  %v3272_v50 = vld [vmem:[#allocation31 + $0xd0] sm:$0xff]  }
 0x178   :  { %3004 = vmatprep.subr.bf16.mxu0 %v3216_v52  ;;  %3026 = vmatprep.subr.bf16.mxu1 %v3217_v53  ;;  %v3273_v51 = vld [vmem:[#allocation31 + $0x150] sm:$0xff]  }
 0x179   :  { %v3274_v52 = vld [vmem:[#allocation31 + $0x90] sm:$0xff]  }
 0x17a   :  { %1460 = vmatmul.mubr.bf16.vlgmr.msra.gmra.mxu0 %v2805_v55  ;;  %1500 = vmatmul.mubr.bf16.vlgmr.msra.gmra.mxu1 %v2807_v56  ;;  %v3275_v53 = vld [vmem:[#allocation31 + $0x110] sm:$0xff]   ;;  %v3277_v55 = vld [vmem:[#allocation31 + $0x148] sm:$0xff]  }
 0x17b   :  { %3005 = vmatpush3.bf16.msra.mxu0 %v3218_v54  ;;  %3027 = vmatpush3.bf16.msra.mxu1 %v3219_v57  ;;  %v3276_v54 = vld [vmem:[#allocation31 + $0xc8] sm:$0xff]   ;;  %v922_v57 = vld [vmem:[%s4284_s4 + $0x10] sm:$0xff] }
 0x17c   :  { %3006 = vmatprep.subr.bf16.mxu0 %v3220_v58  ;;  %3028 = vmatprep.subr.bf16.mxu1 %v3221_v59  ;;  %v921_v56 = vld [vmem:[%s4284_s4 + $0x8] sm:$0xff]  ;;  %v2864_v59 = vcombine.high %v922_v57, %v922_v57 }
 0x17d   :  { %1539 = vmatprep.mubr.bf16.mxu0 %v2810_v20  ;;  %1888 = vmatprep.mubr.bf16.mxu1 %v2860_v23  ;;  %v2862_v58 = vcombine.high %v921_v56, %v921_v56  ;;  %v2008_v20 = vld [vmem:[#allocation25 + $0xb8] sm:$0xff]  ;;  %v2005_v23 = vld [vmem:[#allocation25 + $0xa0] sm:$0xff] }
 0x17f   :  { %3007 = vmatpush3.bf16.msra.mxu0 %v3222_v60  ;;  %3029 = vmatpush3.bf16.msra.mxu1 %v3223_v61  ;;  %v3278_v60 = vld [vmem:[#allocation31 + $0x88] sm:$0xff]  }
 0x180   :  { %3008 = vmatprep.subr.bf16.mxu0 %v3224_v62  ;;  %3030 = vmatprep.subr.bf16.mxu1 %v3225_v63  ;;  %v3279_v61 = vld [vmem:[#allocation31 + $0x108] sm:$0xff]   ;;  %v3280_v62 = vld [vmem:[#allocation31 + $0xc0] sm:$0xff]  }
 0x181   :  { %v3281_v63 = vld [vmem:[#allocation31 + $0x140] sm:$0xff]  }
 0x183   :  { %3009 = vmatpush3.bf16.msra.mxu0 %v3226_v0  ;;  %3031 = vmatpush3.bf16.msra.mxu1 %v3227_v1  ;;  %v3282_v0 = vld [vmem:[#allocation31 + $0x80] sm:$0xff]  }
 0x184   :  { %3010 = vmatprep.subr.bf16.mxu0 %v3228_v2  ;;  %3032 = vmatprep.subr.bf16.mxu1 %v3229_v4  ;;  %v3283_v1 = vld [vmem:[#allocation31 + $0x100] sm:$0xff]   ;;  %v2861_v2 = vcombine.low %v921_v56, %v921_v56  ;;  %v2863_v4 = vcombine.low %v922_v57, %v922_v57 }
 0x187   :  { %3011 = vmatpush3.bf16.msra.mxu0 %v3230_v5  ;;  %3033 = vmatpush3.bf16.msra.mxu1 %v3231_v6  ;;  %v2120_v5 = vld [vmem:[#allocation37] sm:$0xff] }
 0x188   :  { %3012 = vmatprep.subr.bf16.mxu0 %v3232_v7  ;;  %3034 = vmatprep.subr.bf16.mxu1 %v3233_v8  ;;  %v2915_v6 = vcombine.high %v2120_v5, %v2120_v5  ;;  %v2914_v7 = vcombine.low %v2120_v5, %v2120_v5 }
 0x18a   :  { %v2175_v8 = vsel %vm2173_vm2, %v2914_v7, 0 }
 0x18b   :  { %3013 = vmatpush3.bf16.msra.mxu0 %v3234_v9  ;;  %3035 = vmatpush3.bf16.msra.mxu1 %v3235_v11  ;;  %v3945_v9 = vmov 0   ;;  %v4169_v11 = vld [vmem:[#allocation37 + $0x8] sm:$0xff] }
 0x18c   :  { %3014 = vmatprep.subr.bf16.mxu0 %v3236_v12  ;;  %3036 = vmatprep.subr.bf16.mxu1 %v3237_v13  ;;  %v2917_v12 = vcombine.high %v4169_v11, %v4169_v11  ;;  %v2016_v13 = vld [vmem:[#allocation25 + $0xf8] sm:$0xff] }
 0x18f   :  { %3015 = vmatpush3.bf16.msra.mxu0 %v3238_v14  ;;  %3037 = vmatpush3.bf16.msra.mxu1 %v3239_v15  ;;  %v2014_v14 = vld [vmem:[#allocation25 + $0xe8] sm:$0xff]  ;;  %v2013_v15 = vld [vmem:[#allocation25 + $0xe0] sm:$0xff] }
 0x190   :  { %3016 = vmatprep.subr.bf16.mxu0 %v3240_v16  ;;  %3038 = vmatprep.subr.bf16.mxu1 %v3241_v17  ;;  %v2012_v16 = vld [vmem:[#allocation25 + $0xd8] sm:$0xff]  ;;  %v2011_v17 = vld [vmem:[#allocation25 + $0xd0] sm:$0xff] }
 0x193   :  { %3017 = vmatpush3.bf16.msra.mxu0 %v3242_v19  ;;  %3039 = vmatpush3.bf16.msra.mxu1 %v3243_v22  ;;  %v2009_v19 = vld [vmem:[#allocation25 + $0xc0] sm:$0xff]  ;;  %v2006_v22 = vld [vmem:[#allocation25 + $0xa8] sm:$0xff] }
 0x194   :  { %3018 = vmatprep.subr.bf16.mxu0 %v3244_v24  ;;  %3040 = vmatprep.subr.bf16.mxu1 %v3245_v25  ;;  %v2004_v24 = vld [vmem:[#allocation25 + $0x98] sm:$0xff]  ;;  %v2003_v25 = vld [vmem:[#allocation25 + $0x90] sm:$0xff] }
 0x197   :  { %3019 = vmatpush3.bf16.msra.mxu0 %v3246_v26  ;;  %3041 = vmatpush3.bf16.msra.mxu1 %v3247_v27  ;;  %v2002_v26 = vld [vmem:[#allocation25 + $0x88] sm:$0xff]  ;;  %v2001_v27 = vld [vmem:[#allocation25 + $0x80] sm:$0xff] }
 0x198   :  { %3048 = vmatprep.subr.bf16.mxu0 %v3252_v28  ;;  %3070 = vmatprep.subr.bf16.mxu1 %v3253_v29  ;;  %v2000_v28 = vld [vmem:[#allocation25 + $0x78] sm:$0xff]  ;;  %v1999_v29 = vld [vmem:[#allocation25 + $0x70] sm:$0xff] }
 0x19a   :  { %1540 = vmatmul.mubr.bf16.vlgmr.msra.gmra.mxu0 %v2809_v31  ;;  %1889 = vmatmul.mubr.bf16.vlgmr.msra.gmra.mxu1 %v2859_v32  ;;  %v1997_v31 = vld [vmem:[#allocation25 + $0x60] sm:$0xff]  ;;  %v1996_v32 = vld [vmem:[#allocation25 + $0x58] sm:$0xff] }
 0x19b   :  { %3049 = vmatpush3.bf16.msra.mxu0 %v3254_v30  ;;  %3071 = vmatpush3.bf16.msra.mxu1 %v3255_v33  ;;  %v1998_v30 = vld [vmem:[#allocation25 + $0x68] sm:$0xff]  ;;  %v1995_v33 = vld [vmem:[#allocation25 + $0x50] sm:$0xff] }
 0x19c   :  { %3050 = vmatprep.subr.bf16.mxu0 %v3256_v34  ;;  %3072 = vmatprep.subr.bf16.mxu1 %v3257_v35  ;;  %v1994_v34 = vld [vmem:[#allocation25 + $0x48] sm:$0xff]  ;;  %v1993_v35 = vld [vmem:[#allocation25 + $0x40] sm:$0xff] }
 0x19d   :  { %1928 = vmatprep.mubr.bf16.mxu0 %v2862_v58  ;;  %1968 = vmatprep.mubr.bf16.mxu1 %v2864_v59 }
 0x19f   :  { %3051 = vmatpush3.bf16.msra.mxu0 %v3258_v36  ;;  %3073 = vmatpush3.bf16.msra.mxu1 %v3259_v37  ;;  %v1992_v36 = vld [vmem:[#allocation25 + $0x38] sm:$0xff]  ;;  %v1991_v37 = vld [vmem:[#allocation25 + $0x30] sm:$0xff] }
 0x1a0   :  { %3052 = vmatprep.subr.bf16.mxu0 %v3260_v38  ;;  %3074 = vmatprep.subr.bf16.mxu1 %v3261_v39  ;;  %v1990_v38 = vld [vmem:[#allocation25 + $0x28] sm:$0xff]  ;;  %v1989_v39 = vld [vmem:[#allocation25 + $0x20] sm:$0xff] }
 0x1a3   :  { %3053 = vmatpush3.bf16.msra.mxu0 %v3262_v40  ;;  %3075 = vmatpush3.bf16.msra.mxu1 %v3263_v41  ;;  %v1988_v40 = vld [vmem:[#allocation25 + $0x18] sm:$0xff]  ;;  %v1987_v41 = vld [vmem:[#allocation25 + $0x10] sm:$0xff] }
 0x1a4   :  { %3054 = vmatprep.subr.bf16.mxu0 %v3264_v42  ;;  %3076 = vmatprep.subr.bf16.mxu1 %v3265_v43  ;;  %v1986_v42 = vld [vmem:[#allocation25 + $0x8] sm:$0xff]  ;;  %v4174_v43 = vld [vmem:[#allocation38 + $0x8] sm:$0xff] }
 0x1a7   :  { %3055 = vmatpush3.bf16.msra.mxu0 %v3266_v44  ;;  %3077 = vmatpush3.bf16.msra.mxu1 %v3267_v45  ;;  %v1985_v44 = vld [vmem:[#allocation25] sm:$0xff]  ;;  %v2932_v45 = vcombine.high %v4174_v43, %v4174_v43 }
 0x1a8   :  { %3056 = vmatprep.subr.bf16.mxu0 %v3268_v46  ;;  %3078 = vmatprep.subr.bf16.mxu1 %v3269_v47  ;;  %v850_v46 = vlaneseq }
 0x1aa   :  { %v4179_v47 = vshrl.u32 %v850_v46, 7 }
 0x1ab   :  { %3057 = vmatpush3.bf16.msra.mxu0 %v3270_v48  ;;  %3079 = vmatpush3.bf16.msra.mxu1 %v3271_v49 }
 0x1ac   :  { %3058 = vmatprep.subr.bf16.mxu0 %v3272_v50  ;;  %3080 = vmatprep.subr.bf16.mxu1 %v3273_v51  ;;  %v4185_v56 = vsub.s32 1, %v4179_v47 }
 0x1af   :  { %3059 = vmatpush3.bf16.msra.mxu0 %v3274_v52  ;;  %3081 = vmatpush3.bf16.msra.mxu1 %v3275_v53  ;;  %v4182_v52 = vsub.s32 2, %v4179_v47 }
 0x1b0   :  { %3060 = vmatprep.subr.bf16.mxu0 %v3276_v54  ;;  %3082 = vmatprep.subr.bf16.mxu1 %v3277_v55  ;;  %v848_v55 = vld [vmem:[#allocation23] sm:$0x7] }
 0x1b3   :  { %3061 = vmatpush3.bf16.msra.mxu0 %v3278_v60  ;;  %3083 = vmatpush3.bf16.msra.mxu1 %v3279_v61  ;;  %v861_v60 = vrot.slane %v848_v55, %v4182_v52 }
 0x1b4   :  { %3062 = vmatprep.subr.bf16.mxu0 %v3280_v62  ;;  %3084 = vmatprep.subr.bf16.mxu1 %v3281_v63 }
 0x1b7   :  { %3063 = vmatpush3.bf16.msra.mxu0 %v3282_v0  ;;  %3085 = vmatpush3.bf16.msra.mxu1 %v3283_v1  ;;  %v857_v1 = vrot.slane %v848_v55, %v4185_v56 }
 0x1b8   :  { %2920 = vmatprep.subr.msk.bf16.mxu1 %vm2173_vm2, %v2915_v6  ;;  %2029 = vmatprep.subr.mxu0 %v2016_v13 }
 0x1ba   :  { %1929 = vmatmul.mubr.bf16.vlgmr.msra.gmra.mxu0 %v2861_v2  ;;  %1969 = vmatmul.mubr.bf16.vlgmr.msra.gmra.mxu1 %v2863_v4 }
 0x1bb   :  { %2093 = vmatprep.mubr.f32.mxu0 %v3943_v3  ;;  %2207 = vmatpush1.bf16.msra.mxu1 %v2175_v8  ;;  %v2015_v3 = vld [vmem:[#allocation25 + $0xf0] sm:$0xff] }
 0x1bc   :  { %2224 = vmatprep.mubr.bf16.mxu1 %v3945_v9  ;;  %2922 = vmatprep.subr.msk.bf16.mxu1 %vm2173_vm2, %v2917_v12 }
 0x1bd   :  { %2030 = vmatpush1.msra.mxu0 %v2015_v3 }
 0x1be   :  { %2031 = vmatprep.subr.mxu0 %v2014_v14 }
 0x1bf   :  { %2032 = vmatpush1.msra.mxu0 %v2013_v15 }
 0x1c0   :  { %2033 = vmatprep.subr.mxu0 %v2012_v16 }
 0x1c1   :  { %2034 = vmatpush1.msra.mxu0 %v2011_v17 }
 0x1c2   :  { %2035 = vmatprep.subr.mxu0 %v2010_v18 }
 0x1c3   :  { %2036 = vmatpush1.msra.mxu0 %v2009_v19 }
 0x1c4   :  { %2037 = vmatprep.subr.mxu0 %v2008_v20 }
 0x1c5   :  { %2038 = vmatpush1.msra.mxu0 %v2007_v21 }
 0x1c6   :  { %2039 = vmatprep.subr.mxu0 %v2006_v22 }
 0x1c7   :  { %2040 = vmatpush1.msra.mxu0 %v2005_v23 }
 0x1c8   :  { %2041 = vmatprep.subr.mxu0 %v2004_v24 }
 0x1c9   :  { %2042 = vmatpush1.msra.mxu0 %v2003_v25 }
 0x1ca   :  { %2043 = vmatprep.subr.mxu0 %v2002_v26 }
 0x1cb   :  { %2044 = vmatpush1.msra.mxu0 %v2001_v27 }
 0x1cc   :  { %2045 = vmatprep.subr.mxu0 %v2000_v28  ;;  %v4198_v28 = vsub.s32 0, %v4179_v47 }
 0x1cd   :  { %2046 = vmatpush1.msra.mxu0 %v1999_v29 }
 0x1ce   :  { %2047 = vmatprep.subr.mxu0 %v1998_v30 }
 0x1cf   :  { %2048 = vmatpush1.msra.mxu0 %v1997_v31 }
 0x1d0   :  { %2049 = vmatprep.subr.mxu0 %v1996_v32 }
 0x1d1   :  { %2050 = vmatpush1.msra.mxu0 %v1995_v33 }
 0x1d2   :  { %2051 = vmatprep.subr.mxu0 %v1994_v34 }
 0x1d3   :  { %2052 = vmatpush1.msra.mxu0 %v1993_v35 }
 0x1d4   :  { %2053 = vmatprep.subr.mxu0 %v1992_v36 }
 0x1d5   :  { %2054 = vmatpush1.msra.mxu0 %v1991_v37 }
 0x1d6   :  { %2055 = vmatprep.subr.mxu0 %v1990_v38 }
 0x1d7   :  { %2056 = vmatpush1.msra.mxu0 %v1989_v39 }
 0x1d8   :  { %2057 = vmatprep.subr.mxu0 %v1988_v40  ;;  %v853_v40 = vrot.slane %v848_v55, %v4198_v28 }
 0x1d9   :  { %2058 = vmatpush1.msra.mxu0 %v1987_v41 }
 0x1da   :  { %2059 = vmatprep.subr.mxu0 %v1986_v42 }
 0x1db   :  { %2060 = vmatpush1.msra.mxu0 %v1985_v44 }
 0x1dc   :  { %2937 = vmatprep.subr.msk.bf16.mxu0 %vm2173_vm2, %v2932_v45 }
 0x212   :  { %v479_v48 = vpop.f32.mrf.mxu0  ;;  %v550_v49 = vpop.f32.mrf.mxu1 }
 0x214   :  { %v481_v50 = vpop.f32.mrf.mxu0  ;;  %v3096_v51 = vpop.f32.mrf.mxu1 }
 0x216   :  { %v623_v53 = vpop.f32.mrf.mxu0  ;;  %v694_v54 = vpop.f32.mrf.mxu1 }
 0x217   :  { %v695_v59 = vadd.f32 %v694_v54, %v550_v49  ;;  %v624_v34 = vadd.f32 %v623_v53, %v479_v48 }
 0x218   :  { %v625_v57 = vpop.f32.mrf.mxu0  ;;  %v3101_v58 = vpop.f32.mrf.mxu1 }
 0x219   :  { %v626_v63 = vadd.f32 %v625_v57, %v481_v50  ;;  %v3314_v57 = vld [vmem:[#allocation7] sm:$0xff] }
 0x21a   :  { %v770_v61 = vpop.f32.mrf.mxu0  ;;  %v841_v62 = vpop.f32.mrf.mxu1 }
 0x21b   :  { %v847_v0 = vadd.f32 %v841_v62, %v695_v59  ;;  %v845_v39 = vadd.f32 %v770_v61, %v624_v34  ;;  %v904_v62 = vstv %s395_s21 }
 0x21c   :  { %v772_v2 = vpop.f32.mrf.mxu0  ;;  %v3106_v4 = vpop.f32.mrf.mxu1 }
 0x21d   :  { %v867_v5 = vadd.f32 %v861_v60, %v847_v0  ;;  %v846_v6 = vadd.f32 %v772_v2, %v626_v63  ;;  %v865_v50 = vadd.f32 %v853_v40, %v845_v39  ;;  %v3315_v60 = vld [vmem:[#allocation10] sm:$0xff]  ;;  %v911_v2 = vld [vmem:[#allocation11] sm:$0xff] }
 0x21f   :  { %v885_v7 = vand.u32 2147483647, %v867_v5  ;;  %v866_v8 = vadd.f32 %v857_v1, %v846_v6  ;;  %v884_v51 = vmax.f32 %v867_v5, 0.0  ;;  %v899_v58 = vmul.f32 %v3314_v57, %v865_v50  ;;  %v2804_v1 = vld [vmem:[#allocation16] ss:$0 sm:$0xff] }
 0x220   :  { %v918_v5 = vmul.f32 %v2804_v1, %v911_v2 }
 0x221   :  { %v886_v12 = vsub.f32 0.0, %v885_v7  ;;  %v869_v13 = vand.u32 2147483647, %v866_v8  ;;  %v868_v45 = vmax.f32 %v866_v8, 0.0  ;;  %v2916_v8 = vcombine.low %v4169_v11, %v4169_v11 }
 0x223   :  { %v887_v3 = vmul.f32 1.442695, %v886_v12  ;;  %v870_v14 = vsub.f32 0.0, %v869_v13  ;;  %v2122_v12 = vld [vmem:[#allocation37 + $0x10] sm:$0xff] }
 0x225   :  { %3300 = vpow2.f32 %v887_v3  ;;  %v871_v15 = vmul.f32 1.442695, %v870_v14 }
 0x227   :  { %3302 = vpow2.f32 %v871_v15 }
 0x232   :  { %v3301_v16 = vpop.eup %3300 }
 0x233   :  { %v889_v17 = vadd.f32 1.0, %v3301_v16  ;;  %v892_v24 = vmul.f32 -0.5, %v3301_v16  ;;  %v895_v35 = vand.u32 2147483647, %v3301_v16 }
 0x234   :  { %v3303_v18 = vpop.eup %3302 }
 0x235   :  { %3304 = vlog2.f32 %v889_v17  ;;  %v873_v19 = vadd.f32 1.0, %v3303_v18  ;;  %v876_v25 = vmul.f32 -0.5, %v3303_v18  ;;  %v893_v31 = vadd.f32 1.0, %v892_v24 }
 0x236   :  { %v879_v36 = vand.u32 2147483647, %v3303_v18  ;;  %vm896_vm3 = vcmp.lt.f32.partialorder %v895_v35, 0.0004427343 }
 0x237   :  { %3306 = vlog2.f32 %v873_v19  ;;  %v877_v32 = vadd.f32 1.0, %v876_v25  ;;  %v894_v41 = vmul.f32 %v3301_v16, %v893_v31 }
 0x238   :  { %vm880_vm4 = vcmp.lt.f32.partialorder %v879_v36, 0.0004427343 }
 0x239   :  { %v878_v44 = vmul.f32 %v3303_v18, %v877_v32  ;;  %v2181_v18 = vsel %vm2173_vm2, %v2916_v8, 0  ;;  %v2379_v32 = vld [vmem:[#allocation38 + $0x10] sm:$0xff] }
 0x23a   :  { %v4189_v20 = vpop.f32.mrf.mxu0  ;;  %v4191_v21 = vpop.f32.mrf.mxu1  ;;  %v2934_v34 = vcombine.high %v2379_v32, %v2379_v32  ;;  %v2933_v35 = vcombine.low %v2379_v32, %v2379_v32 }
 0x23c   :  { %v4193_v22 = vpop.f32.mrf.mxu0  ;;  %v4195_v23 = vpop.f32.mrf.mxu1 }
 0x23d   :  { %v2978_v36 = vadd.f32 %v4193_v22, %v4189_v20 }
 0x23e   :  { %v2979_v26 = vpop.f32.mrf.mxu0  ;;  %v3001_v27 = vpop.f32.mrf.mxu1 }
 0x23f   :  { %v2918_v26 = vcombine.low %v2122_v12, %v2122_v12  ;;  %v2377_v27 = vld [vmem:[#allocation38] sm:$0xff] }
 0x240   :  { %v2980_v29 = vpop.f32.mrf.mxu0  ;;  %v3002_v30 = vpop.f32.mrf.mxu1  ;;  %v2929_v31 = vcombine.low %v2377_v27, %v2377_v27 }
 0x241   :  { %v2187_v29 = vsel %vm2173_vm2, %v2918_v26, 0  ;;  %v2930_v30 = vcombine.high %v2377_v27, %v2377_v27  ;;  %v2147_v27 = vsub.s32 5, %v4179_v47 }
 0x242   :  { %v3305_v33 = vpop.eup %3304 }
 0x243   :  { %v891_v37 = vmul.f32 0.6931472, %v3305_v33  ;;  %v2428_v33 = vsel %vm2173_vm2, %v2929_v31, 0 }
 0x244   :  { %v3307_v38 = vpop.eup %3306 }
 0x245   :  { %v875_v42 = vmul.f32 0.6931472, %v3307_v38  ;;  %v897_v46 = vsel %vm896_vm3, %v894_v41, %v891_v37  ;;  %v3000_v37 = vadd.f32 %v4195_v23, %v4191_v21  ;;  %v2440_v38 = vsel %vm2173_vm2, %v2933_v35, 0 }
 0x246   :  { %v898_v48 = vadd.f32 %v897_v46, %v884_v51 }
 0x247   :  { %v881_v49 = vsel %vm880_vm4, %v878_v44, %v875_v42  ;;  %v1502_v40 = vadd.f32 %v3000_v37, %v2978_v36 }
 0x248   :  { %v882_v54 = vadd.f32 %v881_v49, %v868_v45  ;;  %v902_v55 = vmul.f32 %v3315_v60, %v898_v48 }
 0x24a   :  { %v883_v53 = vsub.f32 0.0, %v882_v54  ;;  %v2913_v54 = vld [vmem:[#allocation28] ss:$0 sm:$0xff] }
 0x24c   :  { %v900_v59 = vmul.f32 %v883_v53, %v4145_v10 }
 0x24e   :  { %v901_v61 = vadd.f32 %v900_v59, %v899_v58  ;;  %v2931_v58 = vcombine.low %v4174_v43, %v4174_v43  ;;  %v2139_v43 = vsub.s32 3, %v4179_v47 }
 0x250   :  { %v903_v63 = vadd.f32 %v902_v55, %v901_v61  ;;  %v2434_v55 = vsel %vm2173_vm2, %v2931_v58, 0  ;;  %v2123_v61 = vld [vmem:[%s4285_s15] sm:$0x3f] }
 0x251   :  { %v2148_v37 = vrot.slane %v2123_v61, %v2147_v27 }
 0x252   :  { %v905_v0 = vmul.f32 %v904_v62, %v903_v63  ;;  %v2132_v63 = vrot.slane %v2123_v61, %v4185_v56 }
 0x254   :  { %v906_v4 = vadd.f32 %v905_v0, %v4145_v10  ;;  %v2919_v10 = vcombine.high %v2122_v12, %v2122_v12  ;;  %v2136_v12 = vrot.slane %v2123_v61, %v4182_v52 }
 0x256   :  { %v908_v6 = vmul.f32 %v906_v4, %v904_v62  ;;  %907 = vst.msk [vmem:[#allocation40] sm:$0xff] %vm409_vm1, %v906_v4  ;;  %v2128_v62 = vrot.slane %v2123_v61, %v4198_v28 }
 0x258   :  { %v4204_v7 = vadd.f32 %v3314_v57, %v908_v6  ;;  %v2316_v6 = vld [vmem:[#allocation34 + $0x8] sm:$0xff] }
 0x25a   :  { %v3020_v13 = vpop.f32.mrf.mxu0  ;;  %v3042_v3 = vpop.f32.mrf.mxu1  ;;  %v919_v14 = vadd.f32 %v918_v5, %v4204_v7 }
 0x25c   :  { %v3021_v15 = vpop.f32.mrf.mxu0  ;;  %v3043_v16 = vpop.f32.mrf.mxu1  ;;  %v2119_v17 = vpack.c.bf16 %v919_v14, %v919_v14  ;;  %v2140_v14 = vrot.slane %v2123_v61, %v2139_v43 }
 0x25d   :  { %v3022_v39 = vadd.f32 %v3021_v15, %v3020_v13  ;;  %v3044_v42 = vadd.f32 %v3043_v16, %v3042_v3  ;;  %v2315_v13 = vld [vmem:[#allocation34] sm:$0xff]  ;;  %v2317_v16 = vld [vmem:[#allocation34 + $0x10] sm:$0xff] }
 0x25e   :  { %v3023_v19 = vpop.f32.mrf.mxu0  ;;  %v3045_v24 = vpop.f32.mrf.mxu1  ;;  %2921 = vmatmul.mubr.msk.bf16.vlgmr.msra.gmra.mxu1 %vm409_vm1, %v2119_v17 }
 0x25f   :  { %2248 = vmatpush1.bf16.msra.mxu1 %v2181_v18  ;;  %2265 = vmatprep.mubr.bf16.mxu1 %v3945_v9  ;;  %v1542_v41 = vadd.f32 %v3022_v39, %v1502_v40  ;;  %v2318_v24 = vld [vmem:[#allocation34 + $0x18] sm:$0xff]  ;;  %v2319_v39 = vld [vmem:[#allocation34 + $0x20] sm:$0xff] }
 0x260   :  { %v3024_v25 = vpop.f32.mrf.mxu0  ;;  %v3046_v11 = vpop.f32.mrf.mxu1  ;;  %2924 = vmatprep.subr.msk.bf16.mxu1 %vm2173_vm2, %v2919_v10 }
 0x261   :  { %v1891_v50 = vadd.f32 %v3044_v42, %v1542_v41 }
 0x266   :  { %2923 = vmatmul.mubr.msk.bf16.vlgmr.msra.gmra.mxu1 %vm409_vm1, %v2119_v17 }
 0x267   :  { %2289 = vmatpush1.bf16.msra.mxu1 %v2187_v29  ;;  %2306 = vmatprep.mubr.bf16.mxu1 %v3945_v9 }
 0x268   :  { %2935 = vmatprep.subr.msk.bf16.mxu1 %vm2173_vm2, %v2930_v30 }
 0x26e   :  { %2925 = vmatmul.mubr.msk.bf16.vlgmr.msra.gmra.mxu1 %vm409_vm1, %v2119_v17 }
 0x26f   :  { %2460 = vmatpush1.bf16.msra.mxu1 %v2428_v33  ;;  %2477 = vmatprep.mubr.bf16.mxu1 %v3945_v9 }
 0x270   :  { %2939 = vmatprep.subr.msk.bf16.mxu1 %vm2173_vm2, %v2934_v34 }
 0x276   :  { %2936 = vmatmul.mubr.msk.bf16.vlgmr.msra.gmra.mxu1 %vm409_vm1, %v2119_v17 }
 0x277   :  { %2542 = vmatpush1.bf16.msra.mxu1 %v2440_v38  ;;  %2559 = vmatprep.mubr.bf16.mxu1 %v3945_v9 }
 0x27a   :  { %v3064_v44 = vpop.f32.mrf.mxu0  ;;  %v3086_v45 = vpop.f32.mrf.mxu1 }
 0x27c   :  { %v3065_v46 = vpop.f32.mrf.mxu0  ;;  %v3087_v49 = vpop.f32.mrf.mxu1 }
 0x27d   :  { %v3066_v20 = vadd.f32 %v3065_v46, %v3064_v44  ;;  %v3088_v23 = vadd.f32 %v3087_v49, %v3086_v45  ;;  %v2320_v45 = vld [vmem:[#allocation34 + $0x28] sm:$0xff] }
 0x27e   :  { %v3067_v22 = vpop.f32.mrf.mxu0  ;;  %v3089_v51 = vpop.f32.mrf.mxu1  ;;  %2940 = vmatmul.mubr.msk.bf16.vlgmr.msra.gmra.mxu1 %vm409_vm1, %v2119_v17 }
 0x27f   :  { %v1931_v21 = vadd.f32 %v3066_v20, %v1891_v50  ;;  %v2380_v20 = vld [vmem:[%s4286_s0] sm:$0x3f] }
 0x280   :  { %v3068_v48 = vpop.f32.mrf.mxu0  ;;  %v3090_v53 = vpop.f32.mrf.mxu1 }
 0x281   :  { %v1971_v57 = vadd.f32 %v3088_v23, %v1931_v21  ;;  %v2385_v48 = vrot.slane %v2380_v20, %v4198_v28  ;;  %v2389_v53 = vrot.slane %v2380_v20, %v4185_v56 }
 0x283   :  { %v1983_v59 = vadd.f32 %v2913_v54, %v1971_v57 }
 0x285   :  { %v1984_v60 = vmax.f32 %v1983_v59, 0.0 }
 0x287   :  { %2094 = vmatmul.mubr.f32.vlgmr.msra.gmra.mxu0 %v1984_v60 }
 0x288   :  { %2501 = vmatpush1.bf16.msra.mxu0 %v2434_v55  ;;  %2518 = vmatprep.mubr.bf16.mxu0 %v3945_v9 }
 0x28b   :  { %2938 = vmatmul.mubr.msk.bf16.vlgmr.msra.gmra.mxu0 %vm409_vm1, %v2119_v17  ;;  %v2143_v17 = vsub.s32 4, %v4179_v47 }
 0x28d   :  { %v2144_v30 = vrot.slane %v2123_v61, %v2143_v17 }
 0x31e   :  { %v2226_v0 = vpop.f32.mrf.mxu1 }
 0x31f   :  { %v2227_v2 = vadd.f32 %v2226_v0, %v2128_v62 }
 0x320   :  { %v2228_v1 = vpop.f32.mrf.mxu1 }
 0x321   :  { %v2229_v4 = vadd.f32 %v2228_v1, %v2132_v63  ;;  %v2321_v18 = vsub.f32 %v2227_v2, %v2315_v13 }
 0x322   :  { %v2230_v5 = vpop.f32.mrf.mxu1 }
 0x323   :  { %v2948_v8 = vpack.c.bf16 %v2229_v4, %v2227_v2  ;;  %v2322_v3 = vsub.f32 %v2229_v4, %v2316_v6  ;;  %v2327_v31 = vmul.f32 %v2321_v18, %v2321_v18  ;;  %v2401_v2 = vrot.slane %v2380_v20, %v2143_v17 }
 0x324   :  { %v2231_v9 = vpop.f32.mrf.mxu1  ;;  %v2405_v4 = vrot.slane %v2380_v20, %v2147_v27 }
 0x325   :  { %2374 = vst [vmem:[#allocation43] sm:$0xff] %v2948_v8  ;;  %v2328_v25 = vmul.f32 %v2322_v3, %v2322_v3  ;;  %v2569_v3 = vld [vmem:[#allocation35 + $0x8] sm:$0xff] }
 0x326   :  { %v2267_v15 = vpop.f32.mrf.mxu1 }
 0x327   :  { %v2268_v10 = vadd.f32 %v2267_v15, %v2136_v12  ;;  %v2333_v36 = vadd.f32 %v2328_v25, %v2327_v31  ;;  %v2017_v15 = vld [vmem:[#allocation26] sm:$0x3]  ;;  %v2572_v31 = vld [vmem:[#allocation35 + $0x20] sm:$0xff] }
 0x328   :  { %v2269_v19 = vpop.f32.mrf.mxu1  ;;  %v2026_v18 = vrot.slane %v2017_v15, %v4185_v56 }
 0x329   :  { %v2323_v11 = vsub.f32 %v2268_v10, %v2317_v16  ;;  %v2270_v26 = vadd.f32 %v2269_v19, %v2140_v14  ;;  %v2568_v16 = vld [vmem:[#allocation35] sm:$0xff] }
 0x32a   :  { %v2271_v29 = vpop.f32.mrf.mxu1 }
 0x32b   :  { %v2329_v32 = vmul.f32 %v2323_v11, %v2323_v11  ;;  %v2324_v33 = vsub.f32 %v2270_v26, %v2318_v24  ;;  %v2949_v34 = vpack.c.bf16 %v2270_v26, %v2268_v10  ;;  %v2393_v24 = vrot.slane %v2380_v20, %v4182_v52 }
 0x32c   :  { %v2272_v35 = vpop.f32.mrf.mxu1  ;;  %v2397_v26 = vrot.slane %v2380_v20, %v2139_v43 }
 0x32d   :  { %2375 = vst [vmem:[#allocation43 + $0x8] sm:$0xff] %v2949_v34  ;;  %v2334_v40 = vadd.f32 %v2333_v36, %v2329_v32  ;;  %v2330_v41 = vmul.f32 %v2324_v33, %v2324_v33  ;;  %v2571_v36 = vld [vmem:[#allocation35 + $0x18] sm:$0xff] }
 0x32e   :  { %v2308_v38 = vpop.f32.mrf.mxu1 }
 0x32f   :  { %v2309_v42 = vadd.f32 %v2308_v38, %v2144_v30  ;;  %v2335_v23 = vadd.f32 %v2334_v40, %v2330_v41  ;;  %v2570_v30 = vld [vmem:[#allocation35 + $0x10] sm:$0xff]  ;;  %v2573_v40 = vld [vmem:[#allocation35 + $0x28] sm:$0xff] }
 0x330   :  { %v2310_v44 = vpop.f32.mrf.mxu1 }
 0x331   :  { %v2325_v46 = vsub.f32 %v2309_v42, %v2319_v39  ;;  %v2311_v49 = vadd.f32 %v2310_v44, %v2148_v37 }
 0x332   :  { %v2312_v50 = vpop.f32.mrf.mxu1 }
 0x333   :  { %v2331_v22 = vmul.f32 %v2325_v46, %v2325_v46  ;;  %v2950_v51 = vpack.c.bf16 %v2311_v49, %v2309_v42  ;;  %v2326_v21 = vsub.f32 %v2311_v49, %v2320_v45 }
 0x334   :  { %v2313_v54 = vpop.f32.mrf.mxu1 }
 0x335   :  { %2376 = vst [vmem:[#allocation43 + $0x10] sm:$0xff] %v2950_v51  ;;  %v2332_v57 = vmul.f32 %v2326_v21, %v2326_v21  ;;  %v2336_v58 = vadd.f32 %v2335_v23, %v2331_v22 }
 0x336   :  { %v2479_v59 = vpop.f32.mrf.mxu1 }
 0x337   :  { %v2337_v60 = vadd.f32 %v2336_v58, %v2332_v57  ;;  %v2480_v61 = vadd.f32 %v2479_v59, %v2385_v48 }
 0x338   :  { %v2481_v55 = vpop.f32.mrf.mxu1 }
 0x339   :  { %v2482_v62 = vadd.f32 %v2481_v55, %v2389_v53  ;;  %2338 = vadd.xlane.f32.xlu0 %v2337_v60  ;;  %v2574_v25 = vsub.f32 %v2480_v61, %v2568_v16 }
 0x33a   :  { %v2483_v63 = vpop.f32.mrf.mxu1 }
 0x33b   :  { %v2951_v0 = vpack.c.bf16 %v2482_v62, %v2480_v61  ;;  %v2575_v10 = vsub.f32 %v2482_v62, %v2569_v3  ;;  %v2580_v34 = vmul.f32 %v2574_v25, %v2574_v25  ;;  %v2022_v61 = vrot.slane %v2017_v15, %v4198_v28  ;;  %v2944_v28 = vld [vmem:[#allocation14] ss:$0 sm:$0xff]  ;;  %v2945_v15 = vld [vmem:[#allocation17] ss:$0 sm:$0xff] }
 0x33c   :  { %v2484_v1 = vpop.f32.mrf.mxu1 }
 0x33d   :  { %2627 = vst [vmem:[#allocation44] sm:$0xff] %v2951_v0  ;;  %v2581_v27 = vmul.f32 %v2575_v10, %v2575_v10  ;;  %v2115_v0 = vld [vmem:[#allocation13] sm:$0xff] }
 0x33e   :  { %v2561_v6 = vpop.f32.mrf.mxu1 }
 0x33f   :  { %v2562_v8 = vadd.f32 %v2561_v6, %v2401_v2  ;;  %v2586_v39 = vadd.f32 %v2581_v27, %v2580_v34 }
 0x340   :  { %v2563_v5 = vpop.f32.mrf.mxu1 }
 0x341   :  { %v2564_v12 = vadd.f32 %v2563_v5, %v2405_v4  ;;  %v2578_v52 = vsub.f32 %v2562_v8, %v2572_v31 }
 0x342   :  { %v2565_v13 = vpop.f32.mrf.mxu1 }
 0x343   :  { %v2953_v9 = vpack.c.bf16 %v2564_v12, %v2562_v8  ;;  %v2579_v46 = vsub.f32 %v2564_v12, %v2573_v40  ;;  %v2584_v20 = vmul.f32 %v2578_v52, %v2578_v52 }
 0x344   :  { %v2566_v14 = vpop.f32.mrf.mxu1 }
 0x345   :  { %2629 = vst [vmem:[#allocation44 + $0x10] sm:$0xff] %v2953_v9  ;;  %v2585_v51 = vmul.f32 %v2579_v46, %v2579_v46 }
 0x347   :  { %v2095_v19 = vpop.f32.mrf.mxu0 }
 0x348   :  { %v2096_v2 = vadd.f32 %v2095_v19, %v2022_v61 }
 0x349   :  { %v2097_v17 = vpop.f32.mrf.mxu0 }
 0x34a   :  { %v2098_v11 = vadd.f32 %v2097_v17, %v2026_v18  ;;  %v2633_v5 = vsub.f32 %v2096_v2, %v4204_v7  ;;  %v2668_v13 = vmul.f32 %v2096_v2, %v2096_v2 }
 0x34b   :  { %v2520_v29 = vpop.f32.mrf.mxu0 }
 0x34c   :  { %v2101_v32 = vand.u32 2147483647, %v2098_v11  ;;  %v2521_v33 = vadd.f32 %v2520_v29, %v2393_v24  ;;  %v2100_v62 = vmax.f32 %v2098_v11, 0.0  ;;  %v2642_v12 = vmul.f32 %v2633_v5, %v2633_v5 }
 0x34d   :  { %v2522_v35 = vpop.f32.mrf.mxu0 }
 0x34e   :  { %v2102_v56 = vsub.f32 0.0, %v2101_v32  ;;  %v2576_v37 = vsub.f32 %v2521_v33, %v2570_v30  ;;  %v2523_v38 = vadd.f32 %v2522_v35, %v2397_v26 }
 0x34f   :  { %v2524_v41 = vpop.f32.mrf.mxu0 }
 0x350   :  { %v2103_v42 = vmul.f32 1.442695, %v2102_v56  ;;  %v2582_v44 = vmul.f32 %v2576_v37, %v2576_v37  ;;  %v2577_v47 = vsub.f32 %v2523_v38, %v2571_v36  ;;  %v2952_v43 = vpack.c.bf16 %v2523_v38, %v2521_v33 }
 0x351   :  { %v2525_v45 = vpop.f32.mrf.mxu0 }
 0x352   :  { %3308 = vpow2.f32 %v2103_v42  ;;  %v2587_v49 = vadd.f32 %v2586_v39, %v2582_v44  ;;  %v2583_v50 = vmul.f32 %v2577_v47, %v2577_v47  ;;  %2628 = vst [vmem:[#allocation44 + $0x8] sm:$0xff] %v2952_v43 }
 0x354   :  { %v2588_v22 = vadd.f32 %v2587_v49, %v2583_v50 }
 0x356   :  { %v2589_v21 = vadd.f32 %v2588_v22, %v2584_v20 }
 0x358   :  { %v2590_v23 = vadd.f32 %v2589_v21, %v2585_v51 }
 0x35a   :  { %2591 = vadd.xlane.f32.xlu0 %v2590_v23 }
 0x35f   :  { %v3309_v54 = vpop.eup %3308 }
 0x360   :  { %v2105_v48 = vadd.f32 1.0, %v3309_v54  ;;  %v2108_v53 = vmul.f32 -0.5, %v3309_v54  ;;  %v2111_v58 = vand.u32 2147483647, %v3309_v54 }
 0x362   :  { %3310 = vlog2.f32 %v2105_v48  ;;  %v2109_v57 = vadd.f32 1.0, %v2108_v53  ;;  %vm2112_vm5 = vcmp.lt.f32.partialorder %v2111_v58, 0.0004427343 }
 0x364   :  { %v2110_v55 = vmul.f32 %v3309_v54, %v2109_v57 }
 0x36f   :  { %v3311_v59 = vpop.eup %3310 }
 0x370   :  { %v2107_v60 = vmul.f32 0.6931472, %v3311_v59 }
 0x372   :  { %v2113_v63 = vsel %vm2112_vm5, %v2110_v55, %v2107_v60 }
 0x373   :  { %v2114_v1 = vadd.f32 %v2113_v63, %v2100_v62 }
 0x375   :  { %3312 = vlog2.f32 %v2114_v1  ;;  %v2116_v4 = vmul.f32 %v2115_v0, %v2114_v1  ;;  %v2632_v8 = vmul.f32 %v2114_v1, %v2114_v1 }
 0x377   :  { %v2117_v6 = vadd.f32 %v2116_v4, %v2096_v2  ;;  %v2643_v9 = vadd.f32 %v2642_v12, %v2632_v8  ;;  %v2669_v3 = vadd.f32 %v2668_v13, %v2632_v8 }
 0x379   :  { %2118 = vst.msk [vmem:[#allocation41] sm:$0xff] %vm409_vm1, %v2117_v6  ;;  %v2651_v10 = vmul.f32 %v2945_v15, %v2643_v9  ;;  %v2670_v19 = vmul.f32 0.5, %v2669_v3 }
 0x382   :  { %v3313_v14 = vpop.eup %3312 }
 0x383   :  { %v2631_v16 = vmul.f32 0.6931472, %v3313_v14 }
 0x385   :  { %v2641_v18 = vsub.f32 %v2944_v28, %v2631_v16  ;;  %v2667_v24 = vsub.f32 0.0, %v2631_v16 }
 0x387   :  { %v2652_v25 = vadd.f32 %v2651_v10, %v2641_v18  ;;  %v2671_v17 = vadd.f32 %v2670_v19, %v2667_v24 }
 0x389   :  { %v2946_v11 = vadd.f32 -0.5, %v2652_v25  ;;  %v2947_v27 = vadd.f32 -0.5, %v2671_v17 }
 0x38b   :  { %v2654_v26 = vsel %vm409_vm1, %v2946_v11, 0.0  ;;  %v2673_v7 = vsel %vm409_vm1, %v2947_v27, 0.0 }
 0x38c   :  { %2655 = vadd.xlane.f32.xlu1 %v2654_v26 }
 0x390   :  { %2674 = vadd.xlane.f32.xlu1 %v2673_v7 }
 0x3c2   :  { %v2339_v29 = vpop.xlane.xlu0 %2338 }
 0x3c3   :  { %v2340_v30 = vrot.slane %v2339_v29, 4 }
 0x3c5   :  { %v2341_v31 = vadd.f32 %v2340_v30, %v2339_v29 }
 0x3c7   :  { %v2342_v32 = vrot.slane %v2341_v31, 2 }
 0x3c9   :  { %v2343_v33 = vadd.f32 %v2342_v32, %v2341_v31 }
 0x3cb   :  { %v2344_v34 = vrot.slane %v2343_v33, 1 }
 0x3cd   :  { %v2345_v35 = vadd.f32 %v2344_v34, %v2343_v33 }
 0x3cf   :  { %3107 = vpush %v2345_v35 }
 0x3d0   :  { %3775 = shalt.err (!%p3772_p2)
}
 0x3d1   :  { %2705 = dma.vmem_to_hbm [thread:$0]  %s2703_s18, 128, %s4094_s14, [#allocation42]  }
 0x3d2   :  { %s3784_s24 = scalar_lea.vmem %s2693_s20, 128  ;;  %p3789_p4 = scmp.lt.s32.totalorder %s2693_s20, %s2693_s20 }
 0x3d3   :  { %p3785_p3 = scmp.ne.s32.totalorder %s2693_s20, %s3784_s24  ;;  %p3790_p5 = scmp.lt.s32.totalorder %s3784_s24, %s3784_s24 }
 0x3d5   :  { %p3791_p6 = por %p3790_p5, %p3789_p4 }
 0x3d7   :  { %p3792_p7 = pnand %p3791_p6, %p3785_p3 }
 0x3d9   :  { %3795 = shalt.err (!%p3792_p7)
}
 0x3da   :  { %s4287_s22 = sld [smem:[#allocation76_spill]]  ;;  %s3948_s8 = smov [#allocation43]  }
 0x3db   :  { %s2712_s23 = sshll.u32 %s3948_s8, 4  ;;  %s3949_s9 = smov [#allocation44]   ;;  %s2713_s23 = int_to_ptr.vmem [resolvable:$true] %s2712_s23 }
 0x3dc   :  { %s2722_s26 = sshll.u32 %s3949_s9, 4  ;;  %s3804_s17 = scalar_lea.vmem %s2713_s23, 384  ;;  %s2723_s26 = int_to_ptr.vmem [resolvable:$true] %s2722_s26 }
 0x3dd   :  { %p3805_p8 = scmp.ne.s32.totalorder %s2713_s23, %s3804_s17  ;;  %p3809_p9 = scmp.lt.s32.totalorder %s2713_s23, %s2713_s23 }
 0x3de   :  { %p3810_p10 = scmp.lt.s32.totalorder %s3804_s17, %s3804_s17 }
 0x3e0   :  { %2695 = dma.vmem_to_hbm [thread:$0]  %s2693_s20, 128, %s4287_s22, [#allocation4]  }
 0x3e1   :  { %p3811_p11 = por %p3810_p10, %p3809_p9 }
 0x3e3   :  { %p3812_p12 = pnand %p3811_p11, %p3805_p8 }
 0x3e5   :  { %3815 = shalt.err (!%p3812_p12)
}
 0x3e6   :  { %2715 = dma.vmem_to_hbm [thread:$0]  %s2713_s23, 384, %s4099_s27, [#allocation42]  }
 0x3e7   :  { %s3824_s14 = scalar_lea.vmem %s2723_s26, 384  ;;  %p3829_p0 = scmp.lt.s32.totalorder %s2723_s26, %s2723_s26 }
 0x3e8   :  { %p3825_p13 = scmp.ne.s32.totalorder %s2723_s26, %s3824_s14  ;;  %p3830_p1 = scmp.lt.s32.totalorder %s3824_s14, %s3824_s14 }
 0x3ea   :  { %p3831_p2 = por %p3830_p1, %p3829_p0 }
 0x3ec   :  { %p3832_p3 = pnand %p3831_p2, %p3825_p13 }
 0x3ee   :  { %3835 = shalt.err (!%p3832_p3)
}
 0x3ef   :  { %2725 = dma.vmem_to_hbm [thread:$0]  %s2723_s26, 384, %s4104_s3, [#allocation45]   ;;  %v2592_v36 = vpop.xlane.xlu0 %2591 }
 0x3f0   :  { %v2593_v56 = vrot.slane %v2592_v36, 4  ;;  %s3950_s11 = smov [#allocation46]  }
 0x3f2   :  { %v2594_v37 = vadd.f32 %v2593_v56, %v2592_v36 }
 0x3f4   :  { %v2595_v38 = vrot.slane %v2594_v37, 2 }
 0x3f6   :  { %v2596_v39 = vadd.f32 %v2595_v38, %v2594_v37 }
 0x3f8   :  { %v2597_v52 = vrot.slane %v2596_v39, 1 }
 0x3fa   :  { %v2598_v40 = vadd.f32 %v2597_v52, %v2596_v39 }
 0x3fc   :  { %3109 = vpush %v2598_v40 }
 0x400   :  { %s3108_s28 = spop %3107 }
 0x401   :  { %s2347_s27 = smul.f32 0.125, %s3108_s28 }
 0x403   :  { %2349 = sst [smem:[#allocation46]] %s2347_s27 }
 0x415   :  { %v2656_v41 = vpop.xlane.xlu1 %2655 }
 0x416   :  { %v2657_v42 = vrot.slane %v2656_v41, 4 }
 0x418   :  { %v2658_v44 = vadd.f32 %v2657_v42, %v2656_v41 }
 0x419   :  { %v2675_v47 = vpop.xlane.xlu1 %2674 }
 0x41a   :  { %v2659_v43 = vrot.slane %v2658_v44, 2  ;;  %v2676_v45 = vrot.slane %v2675_v47, 4 }
 0x41c   :  { %v2677_v46 = vadd.f32 %v2676_v45, %v2675_v47  ;;  %v2660_v49 = vadd.f32 %v2659_v43, %v2658_v44 }
 0x41e   :  { %v2678_v50 = vrot.slane %v2677_v46, 2  ;;  %v2661_v20 = vrot.slane %v2660_v49, 1 }
 0x420   :  { %v2679_v22 = vadd.f32 %v2678_v50, %v2677_v46  ;;  %v2662_v51 = vadd.f32 %v2661_v20, %v2660_v49 }
 0x422   :  { %3111 = vpush %v2662_v51  ;;  %v2680_v21 = vrot.slane %v2679_v22, 1 }
 0x424   :  { %v2681_v23 = vadd.f32 %v2680_v21, %v2679_v22 }
 0x426   :  { %3113 = vpush %v2681_v23 }
 0x42d   :  { %s3110_s3 = spop %3109 }
 0x42e   :  { %s2600_s1 = smul.f32 0.125, %s3110_s3 }
 0x430   :  { %2602 = sst [smem:[#allocation46 + $0x1]] %s2600_s1 }
 0x453   :  { %s3112_s19 = spop %3111 }
 0x454   :  { %s2664_s30 = smul.f32 0.125, %s3112_s19 }
 0x456   :  { %2666 = sst [smem:[#allocation46 + $0x2]] %s2664_s30 }
 0x457   :  { %s3114_s2 = spop %3113 }
 0x458   :  { %s2683_s12 = smul.f32 0.125, %s3114_s2 }
 0x45a   :  { %2685 = sst [smem:[#allocation46 + $0x3]] %s2683_s12 }
 0x45b   :  { %2733 = dma.smem_to_hbm %s3950_s11, 16, %s4109_s6, [#allocation6]  }
 0x45c   :  { %3878 = dma.done.wait [#allocation4], 128  }
 0x45d   :  { %3879 = vsyncadd [#allocation4], 4294967168 }
 0x45e   :  { %3880 = dma.done.wait [#allocation42], 512  }
 0x45f   :  { %3881 = vsyncadd [#allocation42], 4294966784 }
 0x460   :  { %3882 = dma.done.wait [#allocation45], 384  }
 0x461   :  { %3883 = vsyncadd [#allocation45], 4294966912 }
 0x462   :  { %3884 = dma.done.wait [#allocation6], 16  }
 0x463   :  { %3885 = vsyncadd [#allocation6], 4294967280 }
 0x464   :  { %2749 = sfence }
 0x465   :  { %2750 = vsyncpa [#allocation3], 1 }
 0x466   :  { %2751 = vsyncpa [#allocation9], 1 }
 0x467   :  { %2752 = vsyncpa [#allocation12], 1 }
 0x468   :  { %2753 = vsyncpa [#allocation15], 1 }
 0x469   :  { %2754 = vsyncpa [#allocation18], 1 }
 0x46a   :  { %2755 = vsyncpa [#allocation21], 1 }
 0x46b   :  { %2756 = vsyncpa [#allocation24], 1 }
 0x46c   :  { %2757 = vsyncpa [#allocation27], 1 }
 0x46d   :  { %2758 = vsyncpa [#allocation30], 1 }
 0x46e   :  { %2759 = vsyncpa [#allocation33], 1 }
 0x46f   :  { %2760 = vsyncpa [#allocation36], 1 }
 0x470   :  { %2761 = vsyncpa [#allocation39], 1 }
 0x471   :  { %2762 = vsyncpa [#allocation4], 1 }
 0x472   :  { %2763 = vsyncpa [#allocation42], 1 }
 0x473   :  { %2764 = vsyncpa [#allocation45], 1 }
 0x474   :  { %2765 = vsyncpa [#allocation5], 1 }
 0x475   :  { %2766 = vsyncpa [#allocation6], 1 }

</bundles_post_ra>
